<compile_context>
chip_gen: v7x
topology: tpu7x:2x2x1
jax: 0.10.0
libtpu: 0.0.40
codegen_flags: <defaults>
</compile_context>

<pallas_src>
import functools

import jax
import jax.numpy as jnp
from jax.experimental import pallas as pl
from jax.experimental.pallas import tpu as pltpu


# ----------------------------------------------------------------------------
# Kernel: one grid step = (one batch element, one encoder layer)
# ----------------------------------------------------------------------------
def _mfvit_kernel(
    xp_ref, ew_ref, pos_ref,
    ln1g_ref, ln1b_ref, wqkv_ref, bqkv_ref, wo_ref, bo_ref,
    ln2g_ref, ln2b_ref, w1_ref, b1_ref, w2_ref, b2_ref,
    hw_ref, hb_ref,
    o_ref,
    tok_ref,
    *, num_heads, num_layers,
):
    l = pl.program_id(1)
    eps = 1e-5

    def layer_norm(v, g, b):
        mu = jnp.mean(v, axis=-1, keepdims=True)
        var = jnp.mean((v - mu) ** 2, axis=-1, keepdims=True)
        return (v - mu) * jax.lax.rsqrt(var + eps) * g + b

    # ---- patch embedding (first layer step only): tok = patches@Wp + (pos+bp) ----
    @pl.when(l == 0)
    def _():
        tok_ref[...] = (
            jnp.dot(xp_ref[...], ew_ref[...], preferred_element_type=jnp.float32)
            + pos_ref[...]
        )

    tok = tok_ref[...]                               # (N, D) f32 residual stream
    N, D = tok.shape
    dh = D // num_heads

    # ---- LN1 + multi-head self-attention (per-batch, no mask needed) ----
    xn = layer_norm(tok, ln1g_ref[...], ln1b_ref[...])          # f32
    qkv = (
        jnp.dot(xn.astype(jnp.bfloat16), wqkv_ref[...],
                preferred_element_type=jnp.float32)
        + bqkv_ref[...]
    )                                                            # (N, 3D) f32
    # 1/sqrt(dh) is pre-folded into Wq / bq (wrapper-side).
    q = qkv[:, 0 * D:1 * D].astype(jnp.bfloat16)
    k = qkv[:, 1 * D:2 * D].astype(jnp.bfloat16)
    v = qkv[:, 2 * D:3 * D].astype(jnp.bfloat16)

    heads = []
    # TODO(synk): at production head counts (12+) switch this static unroll to
    # lax.fori_loop(..., unroll=True) / a grid axis to bound live ranges.
    for h in range(num_heads):
        sl = slice(h * dh, (h + 1) * dh)
        s = jnp.einsum("nd,md->nm", q[:, sl], k[:, sl],
                       preferred_element_type=jnp.float32)       # f32 scores
        s = s - jnp.max(s, axis=-1, keepdims=True)
        p = jnp.exp(s)                                           # f32 softmax
        p = p * pl.reciprocal(jnp.sum(p, axis=-1, keepdims=True), approx=True)
        heads.append(jnp.dot(p.astype(jnp.bfloat16), v[:, sl],
                             preferred_element_type=jnp.float32))  # (N, dh)
    attn = jnp.concatenate(heads, axis=-1)                       # (N, D)
    tok = tok + (
        jnp.dot(attn.astype(jnp.bfloat16), wo_ref[...],
                preferred_element_type=jnp.float32)
        + bo_ref[...]
    )

    # ---- LN2 + MLP (tanh-approximate GELU, matches the JAX reference) ----
    xn2 = layer_norm(tok, ln2g_ref[...], ln2b_ref[...])
    h1 = (
        jnp.dot(xn2.astype(jnp.bfloat16), w1_ref[...],
                preferred_element_type=jnp.float32)
        + b1_ref[...]
    )
    h1 = jax.nn.gelu(h1, approximate=True)
    # TODO(synk): at ViT-Base sizes on v7x, tile the MLP over the hidden dim.
    tok = tok + (
        jnp.dot(h1.astype(jnp.bfloat16), w2_ref[...],
                preferred_element_type=jnp.float32)
        + b2_ref[...]
    )

    tok_ref[...] = tok

    # ---- head (last layer step only): mean-pool + classifier (lane-dense) ----
    @pl.when(l == num_layers - 1)
    def _():
        pooled = jnp.mean(tok, axis=0, keepdims=True)            # (1, D) f32
        o_ref[...] = (
            jnp.dot(pooled.astype(jnp.bfloat16), hw_ref[...],
                    preferred_element_type=jnp.float32)
            + hb_ref[...]
        )


# ----------------------------------------------------------------------------
# Wrapper-side layout plumbing
# ----------------------------------------------------------------------------
def patchify(x, patch):
    # NCHW -> (B, N, C*ph*pw), channel-major per patch (Conv2d weight layout).
    B, Cc, H, W = x.shape
    gh, gw = H // patch, W // patch
    x = x.reshape(B, Cc, gh, patch, gw, patch)
    x = jnp.transpose(x, (0, 2, 4, 1, 3, 5))
    return x.reshape(B, gh * gw, Cc * patch * patch), gh * gw


def _pack_params(params, num_heads):
    """Stack per-block params on a leading depth axis; fold score scale into Wq."""
    D = params["embed_w"].shape[1]
    dh = D // num_heads
    scale = 1.0 / (dh ** 0.5)
    bf = jnp.bfloat16

    def stack(fn, dtype=jnp.float32):
        return jnp.stack([fn(b) for b in params["blocks"]], 0).astype(dtype)

    def scaled_wqkv(p):
        w = p["wqkv"]
        return jnp.concatenate([w[:, :D] * scale, w[:, D:]], axis=1)

    def scaled_bqkv(p):
        b = p["bqkv"]
        return jnp.concatenate([b[:D] * scale, b[D:]], axis=0).reshape(1, 3 * D)

    return {
        "ln1_g": stack(lambda p: p["ln1_g"].reshape(1, D)),
        "ln1_b": stack(lambda p: p["ln1_b"].reshape(1, D)),
        "wqkv": stack(scaled_wqkv, bf),
        "bqkv": stack(scaled_bqkv),
        "wo": stack(lambda p: p["wo"], bf),
        "bo": stack(lambda p: p["bo"].reshape(1, D)),
        "ln2_g": stack(lambda p: p["ln2_g"].reshape(1, D)),
        "ln2_b": stack(lambda p: p["ln2_b"].reshape(1, D)),
        "w1": stack(lambda p: p["w1"], bf),
        "b1": stack(lambda p: p["b1"].reshape(1, -1)),
        "w2": stack(lambda p: p["w2"], bf),
        "b2": stack(lambda p: p["b2"].reshape(1, D)),
    }


def mfvit_forward(x, params, *, patch, num_heads, lane_pad=128):
    """use_WaveSF=False, SSL=False path: head(backbone(embed(x)))."""
    B = x.shape[0]
    xp, N = patchify(x, patch)                       # (B, N, P)
    P = xp.shape[-1]
    D = params["embed_w"].shape[1]
    Hm = params["blocks"][0]["w1"].shape[1]
    C = params["head_w"].shape[1]
    depth = len(params["blocks"])
    Cp = max(lane_pad, C)

    xp = xp.astype(jnp.bfloat16)
    ew = params["embed_w"].astype(jnp.bfloat16)
    # Fold the conv/embed bias into the (N, D) positional embedding.
    pos = (params["pos"].reshape(N, D) + params["embed_b"].reshape(1, D)).astype(jnp.float32)
    hw = jnp.zeros((D, Cp), jnp.bfloat16).at[:, :C].set(params["head_w"].astype(jnp.bfloat16))
    hb = jnp.zeros((1, Cp), jnp.float32).at[:, :C].set(params["head_b"])
    pk = _pack_params(params, num_heads)

    kern = functools.partial(_mfvit_kernel, num_heads=num_heads, num_layers=depth)

    def layer_spec(shape):   # per-layer weight stacks: (depth, r, c), stream layer l
        return pl.BlockSpec((None,) + shape, lambda b, l: (l, 0, 0))

    def const_spec(shape):   # grid-invariant 2-D params
        return pl.BlockSpec(shape, lambda b, l: (0, 0))

    out = pl.pallas_call(
        kern,
        out_shape=jax.ShapeDtypeStruct((B, 1, Cp), jnp.float32),
        grid=(B, depth),
        in_specs=[
            pl.BlockSpec((None, N, P), lambda b, l: (b, 0, 0)),   # patches (per batch)
            const_spec((P, D)),                                   # embed weight
            const_spec((N, D)),                                   # pos (+ embed bias)
            layer_spec((1, D)), layer_spec((1, D)),               # ln1 gamma/beta
            layer_spec((D, 3 * D)), layer_spec((1, 3 * D)),       # Wqkv / bqkv
            layer_spec((D, D)), layer_spec((1, D)),               # Wo / bo
            layer_spec((1, D)), layer_spec((1, D)),               # ln2 gamma/beta
            layer_spec((D, Hm)), layer_spec((1, Hm)),             # W1 / b1
            layer_spec((Hm, D)), layer_spec((1, D)),              # W2 / b2
            const_spec((D, Cp)),                                  # head weight
            const_spec((1, Cp)),                                  # head bias
        ],
        out_specs=pl.BlockSpec((None, 1, Cp), lambda b, l: (b, 0, 0)),
        scratch_shapes=[pltpu.VMEM((N, D), jnp.float32)],         # resident residual stream
        compiler_params=pltpu.CompilerParams(
            dimension_semantics=("parallel", "arbitrary"),
            vmem_limit_bytes=48 * 1024 * 1024,
        ),
    )(
        xp, ew, pos,
        pk["ln1_g"], pk["ln1_b"], pk["wqkv"], pk["bqkv"], pk["wo"], pk["bo"],
        pk["ln2_g"], pk["ln2_b"], pk["w1"], pk["b1"], pk["w2"], pk["b2"],
        hw, hb,
    )
    return out[:, 0, :C]


# ----------------------------------------------------------------------------
# Pure-JAX f32 reference (same math) for a sanity check
# ----------------------------------------------------------------------------
def _ref_block(x, p, nh):
    def ln(v, g, b):
        mu = jnp.mean(v, -1, keepdims=True)
        var = jnp.mean((v - mu) ** 2, -1, keepdims=True)
        return (v - mu) * jax.lax.rsqrt(var + 1e-5) * g + b

    B, N, D = x.shape
    dh = D // nh
    xn = ln(x, p["ln1_g"], p["ln1_b"])
    qkv = xn @ p["wqkv"] + p["bqkv"]
    q, k, v = jnp.split(qkv, 3, axis=-1)
    q = q.reshape(B, N, nh, dh).transpose(0, 2, 1, 3)
    k = k.reshape(B, N, nh, dh).transpose(0, 2, 1, 3)
    v = v.reshape(B, N, nh, dh).transpose(0, 2, 1, 3)
    s = jnp.einsum("bhqd,bhkd->bhqk", q, k) / jnp.sqrt(jnp.float32(dh))
    a = jax.nn.softmax(s, axis=-1)
    o = jnp.einsum("bhqk,bhkd->bhqd", a, v).transpose(0, 2, 1, 3).reshape(B, N, D)
    x = x + o @ p["wo"] + p["bo"]
    xn2 = ln(x, p["ln2_g"], p["ln2_b"])
    h1 = jax.nn.gelu(xn2 @ p["w1"] + p["b1"], approximate=True)
    return x + h1 @ p["w2"] + p["b2"]


def _ref_forward(x, params, patch, nh):
    xp, N = patchify(x, patch)                       # (B, N, P)
    tok = xp @ params["embed_w"] + params["embed_b"] + params["pos"]
    for blk in params["blocks"]:
        tok = _ref_block(tok, blk, nh)
    pooled = tok.mean(axis=1)
    return pooled @ params["head_w"] + params["head_b"]


# ----------------------------------------------------------------------------
if __name__ == "__main__":
    # Small config
    B, C_in, HW = 2, 4, 16
    patch = 4
    D = 32
    num_heads = 4
    mlp_hidden = 64
    depth = 2
    num_classes = 8
    N = (HW // patch) ** 2
    P = C_in * patch * patch

    key = jax.random.PRNGKey(0)
    ks = iter(jax.random.split(key, 64))
    nrm = lambda shape, s=0.02: (s * jax.random.normal(next(ks), shape)).astype(jnp.float32)

    params = {
        "embed_w": nrm((P, D)),
        "embed_b": nrm((D,)),
        "pos": nrm((1, N, D)),
        "head_w": nrm((D, num_classes)),
        "head_b": nrm((num_classes,)),
        "blocks": [
            {
                "ln1_g": jnp.ones((D,), jnp.float32),
                "ln1_b": jnp.zeros((D,), jnp.float32),
                "wqkv": nrm((D, 3 * D)),
                "bqkv": nrm((3 * D,)),
                "wo": nrm((D, D)),
                "bo": nrm((D,)),
                "ln2_g": jnp.ones((D,), jnp.float32),
                "ln2_b": jnp.zeros((D,), jnp.float32),
                "w1": nrm((D, mlp_hidden)),
                "b1": nrm((mlp_hidden,)),
                "w2": nrm((mlp_hidden, D)),
                "b2": nrm((D,)),
            }
            for _ in range(depth)
        ],
    }

    x = jax.random.normal(jax.random.PRNGKey(1), (B, C_in, HW, HW), jnp.float32)

    fwd = jax.jit(functools.partial(mfvit_forward, patch=patch, num_heads=num_heads))
    out = jax.block_until_ready(fwd(x, params))

    ref = _ref_forward(x, params, patch, num_heads)
    assert out.shape == (B, num_classes)
    err = float(jnp.max(jnp.abs(out - ref)))
    # bf16 MXU operands + approx reciprocal vs f32 reference: allow a few e-3.
    assert err < 5e-3, f"Pallas output mismatch vs JAX reference (max abs err={err})"

    # TODO(synk): WaveSF/SSL backbone branches (pool_a, x_d auxiliary outputs) are
    # training-time paths of the generic wrapper and are not instantiated here.
    print("KERNEL_OK")
</pallas_src>

<mosaic_0001>
module attributes {stable_mosaic.version = 11 : i64} {
  func.func @_mfvit_kernel(%arg0: i32, %arg1: i32, %arg2: memref<1x16x64xbf16, #tpu.memory_space<vmem>>, %arg3: memref<64x32xbf16, #tpu.memory_space<vmem>>, %arg4: memref<16x32xf32, #tpu.memory_space<vmem>>, %arg5: memref<1x1x32xf32, #tpu.memory_space<vmem>>, %arg6: memref<1x1x32xf32, #tpu.memory_space<vmem>>, %arg7: memref<1x32x96xbf16, #tpu.memory_space<vmem>>, %arg8: memref<1x1x96xf32, #tpu.memory_space<vmem>>, %arg9: memref<1x32x32xbf16, #tpu.memory_space<vmem>>, %arg10: memref<1x1x32xf32, #tpu.memory_space<vmem>>, %arg11: memref<1x1x32xf32, #tpu.memory_space<vmem>>, %arg12: memref<1x1x32xf32, #tpu.memory_space<vmem>>, %arg13: memref<1x32x64xbf16, #tpu.memory_space<vmem>>, %arg14: memref<1x1x64xf32, #tpu.memory_space<vmem>>, %arg15: memref<1x64x32xbf16, #tpu.memory_space<vmem>>, %arg16: memref<1x1x32xf32, #tpu.memory_space<vmem>>, %arg17: memref<32x128xbf16, #tpu.memory_space<vmem>>, %arg18: memref<1x128xf32, #tpu.memory_space<vmem>>, %arg19: memref<1x1x128xf32, #tpu.memory_space<vmem>>, %arg20: memref<16x32xf32, #tpu.memory_space<vmem>>) attributes {dimension_semantics = [#tpu.dimension_semantics<parallel>, #tpu.dimension_semantics<arbitrary>], iteration_bounds = array<i64: 2, 2>, scalar_prefetch = 0 : i64, scratch_operands = 1 : i64, tpu.core_type = #tpu.core_type<tc>, window_params = [{transform_indices = @transform_0, window_bounds = array<i64: 1, 16, 64>}, {pipeline_mode = #tpu.pipeline_mode<synchronous>, transform_indices = @transform_1, window_bounds = array<i64: 64, 32>}, {pipeline_mode = #tpu.pipeline_mode<synchronous>, transform_indices = @transform_2, window_bounds = array<i64: 16, 32>}, {transform_indices = @transform_3, window_bounds = array<i64: 1, 1, 32>}, {transform_indices = @transform_4, window_bounds = array<i64: 1, 1, 32>}, {transform_indices = @transform_5, window_bounds = array<i64: 1, 32, 96>}, {transform_indices = @transform_6, window_bounds = array<i64: 1, 1, 96>}, {transform_indices = @transform_7, window_bounds = array<i64: 1, 32, 32>}, {transform_indices = @transform_8, window_bounds = array<i64: 1, 1, 32>}, {transform_indices = @transform_9, window_bounds = array<i64: 1, 1, 32>}, {transform_indices = @transform_10, window_bounds = array<i64: 1, 1, 32>}, {transform_indices = @transform_11, window_bounds = array<i64: 1, 32, 64>}, {transform_indices = @transform_12, window_bounds = array<i64: 1, 1, 64>}, {transform_indices = @transform_13, window_bounds = array<i64: 1, 64, 32>}, {transform_indices = @transform_14, window_bounds = array<i64: 1, 1, 32>}, {pipeline_mode = #tpu.pipeline_mode<synchronous>, transform_indices = @transform_15, window_bounds = array<i64: 32, 128>}, {pipeline_mode = #tpu.pipeline_mode<synchronous>, transform_indices = @transform_16, window_bounds = array<i64: 1, 128>}, {transform_indices = @transform_17, window_bounds = array<i64: 1, 1, 128>}]} {
    %c0_i32 = arith.constant 0 : i32
    %0 = arith.cmpi eq, %arg1, %c0_i32 : i32
    %1 = arith.extui %0 : i1 to i32
    %c0_i32_0 = arith.constant 0 : i32
    %2 = arith.cmpi ne, %1, %c0_i32_0 : i32
    scf.if %2 {
      %c0_74 = arith.constant 0 : index
      %c0_75 = arith.constant 0 : index
      %c0_76 = arith.constant 0 : index
      %178 = vector.load %arg2[%c0_74, %c0_75, %c0_76] : memref<1x16x64xbf16, #tpu.memory_space<vmem>>, vector<1x16x64xbf16>
      %179 = vector.shape_cast %178 : vector<1x16x64xbf16> to vector<16x64xbf16>
      %c0_77 = arith.constant 0 : index
      %c0_78 = arith.constant 0 : index
      %180 = vector.load %arg3[%c0_77, %c0_78] : memref<64x32xbf16, #tpu.memory_space<vmem>>, vector<64x32xbf16>
      %cst_79 = arith.constant dense<0.000000e+00> : vector<16x32xf32>
      %181 = tpu.matmul %179, %180, %cst_79 {dimension_numbers = #tpu.dot_dimension_numbers<[1], [0], [0], [1], [0, 0, 1, 1], [], []>} : vector<16x64xbf16>, vector<64x32xbf16>, vector<16x32xf32> -> vector<16x32xf32>
      %c0_80 = arith.constant 0 : index
      %c0_81 = arith.constant 0 : index
      %182 = vector.load %arg4[%c0_80, %c0_81] : memref<16x32xf32, #tpu.memory_space<vmem>>, vector<16x32xf32>
      %183 = arith.addf %181, %182 : vector<16x32xf32>
      %c0_82 = arith.constant 0 : index
      %c0_83 = arith.constant 0 : index
      %184 = vector.load %arg20[%c0_82, %c0_83] : memref<16x32xf32, #tpu.memory_space<vmem>>, vector<16x32xf32>
      tpu.vector_store %arg20[%c0_82, %c0_83], %183 {strides = array<i32>} : memref<16x32xf32, #tpu.memory_space<vmem>>, vector<16x32xf32>,
    } else {
    }
    %c0 = arith.constant 0 : index
    %c0_1 = arith.constant 0 : index
    %3 = vector.load %arg20[%c0, %c0_1] : memref<16x32xf32, #tpu.memory_space<vmem>>, vector<16x32xf32>
    %c0_2 = arith.constant 0 : index
    %c0_3 = arith.constant 0 : index
    %c0_4 = arith.constant 0 : index
    %4 = vector.load %arg5[%c0_2, %c0_3, %c0_4] : memref<1x1x32xf32, #tpu.memory_space<vmem>>, vector<1x1x32xf32>
    %5 = vector.shape_cast %4 : vector<1x1x32xf32> to vector<1x32xf32>
    %c0_5 = arith.constant 0 : index
    %c0_6 = arith.constant 0 : index
    %c0_7 = arith.constant 0 : index
    %6 = vector.load %arg6[%c0_5, %c0_6, %c0_7] : memref<1x1x32xf32, #tpu.memory_space<vmem>>, vector<1x1x32xf32>
    %7 = vector.shape_cast %6 : vector<1x1x32xf32> to vector<1x32xf32>
    %cst = arith.constant dense<0.000000e+00> : vector<16xf32>
    %8 = vector.multi_reduction <add>, %3, %cst [1] : vector<16x32xf32> to vector<16xf32>
    %9 = vector.shape_cast %8 : vector<16xf32> to vector<16x1xf32>
    %cst_8 = arith.constant 3.200000e+01 : f32
    %10 = vector.broadcast %cst_8 : f32 to vector<16x1xf32>
    %11 = arith.divf %9, %10 : vector<16x1xf32>
    %12 = vector.broadcast %11 : vector<16x1xf32> to vector<16x32xf32>
    %13 = arith.subf %3, %12 : vector<16x32xf32>
    %14 = arith.mulf %13, %13 : vector<16x32xf32>
    %cst_9 = arith.constant dense<0.000000e+00> : vector<16xf32>
    %15 = vector.multi_reduction <add>, %14, %cst_9 [1] : vector<16x32xf32> to vector<16xf32>
    %16 = vector.shape_cast %15 : vector<16xf32> to vector<16x1xf32>
    %cst_10 = arith.constant 3.200000e+01 : f32
    %17 = vector.broadcast %cst_10 : f32 to vector<16x1xf32>
    %18 = arith.divf %16, %17 : vector<16x1xf32>
    %19 = vector.broadcast %11 : vector<16x1xf32> to vector<16x32xf32>
    %20 = arith.subf %3, %19 : vector<16x32xf32>
    %cst_11 = arith.constant 9.99999974E-6 : f32
    %21 = vector.broadcast %cst_11 : f32 to vector<16x1xf32>
    %22 = arith.addf %18, %21 : vector<16x1xf32>
    %23 = math.rsqrt %22 : vector<16x1xf32>
    %24 = vector.broadcast %23 : vector<16x1xf32> to vector<16x32xf32>
    %25 = arith.mulf %20, %24 : vector<16x32xf32>
    %26 = vector.broadcast %5 : vector<1x32xf32> to vector<16x32xf32>
    %27 = arith.mulf %25, %26 : vector<16x32xf32>
    %28 = vector.broadcast %7 : vector<1x32xf32> to vector<16x32xf32>
    %29 = arith.addf %27, %28 : vector<16x32xf32>
    %30 = arith.truncf %29 : vector<16x32xf32> to vector<16x32xbf16>
    %c0_12 = arith.constant 0 : index
    %c0_13 = arith.constant 0 : index
    %c0_14 = arith.constant 0 : index
    %31 = vector.load %arg7[%c0_12, %c0_13, %c0_14] : memref<1x32x96xbf16, #tpu.memory_space<vmem>>, vector<1x32x96xbf16>
    %32 = vector.shape_cast %31 : vector<1x32x96xbf16> to vector<32x96xbf16>
    %cst_15 = arith.constant dense<0.000000e+00> : vector<16x96xf32>
    %33 = tpu.matmul %30, %32, %cst_15 {dimension_numbers = #tpu.dot_dimension_numbers<[1], [0], [0], [1], [0, 0, 1, 1], [], []>} : vector<16x32xbf16>, vector<32x96xbf16>, vector<16x96xf32> -> vector<16x96xf32>
    %c0_16 = arith.constant 0 : index
    %c0_17 = arith.constant 0 : index
    %c0_18 = arith.constant 0 : index
    %34 = vector.load %arg8[%c0_16, %c0_17, %c0_18] : memref<1x1x96xf32, #tpu.memory_space<vmem>>, vector<1x1x96xf32>
    %35 = vector.shape_cast %34 : vector<1x1x96xf32> to vector<1x96xf32>
    %36 = vector.broadcast %35 : vector<1x96xf32> to vector<16x96xf32>
    %37 = arith.addf %33, %36 : vector<16x96xf32>
    %38 = vector.extract_strided_slice %37 {offsets = [0, 0], sizes = [16, 32], strides = [1, 1]} : vector<16x96xf32> to vector<16x32xf32>
    %39 = arith.truncf %38 : vector<16x32xf32> to vector<16x32xbf16>
    %40 = vector.extract_strided_slice %37 {offsets = [0, 32], sizes = [16, 32], strides = [1, 1]} : vector<16x96xf32> to vector<16x32xf32>
    %41 = arith.truncf %40 : vector<16x32xf32> to vector<16x32xbf16>
    %42 = vector.extract_strided_slice %37 {offsets = [0, 64], sizes = [16, 32], strides = [1, 1]} : vector<16x96xf32> to vector<16x32xf32>
    %43 = arith.truncf %42 : vector<16x32xf32> to vector<16x32xbf16>
    %44 = vector.extract_strided_slice %39 {offsets = [0, 0], sizes = [16, 8], strides = [1, 1]} : vector<16x32xbf16> to vector<16x8xbf16>
    %45 = vector.extract_strided_slice %41 {offsets = [0, 0], sizes = [16, 8], strides = [1, 1]} : vector<16x32xbf16> to vector<16x8xbf16>
    "tpu.trace_start"() <{level = 10 : i32, message = "nd,md->nm"}> : () -> ()
    %cst_19 = arith.constant dense<0.000000e+00> : vector<16x16xf32>
    %46 = tpu.matmul %44, %45, %cst_19 {dimension_numbers = #tpu.dot_dimension_numbers<[1], [1], [0], [0], [0, 0, 1, 0], [], []>} : vector<16x8xbf16>, vector<16x8xbf16>, vector<16x16xf32> -> vector<16x16xf32>
    "tpu.trace_stop"() : () -> ()
    %cst_20 = arith.constant dense<0xFF800000> : vector<16xf32>
    %47 = vector.multi_reduction <maximumf>, %46, %cst_20 [1] : vector<16x16xf32> to vector<16xf32>
    %48 = vector.shape_cast %47 : vector<16xf32> to vector<16x1xf32>
    %49 = vector.broadcast %48 : vector<16x1xf32> to vector<16x16xf32>
    %50 = arith.subf %46, %49 : vector<16x16xf32>
    %51 = math.exp %50 : vector<16x16xf32>
    %cst_21 = arith.constant dense<0.000000e+00> : vector<16xf32>
    %52 = vector.multi_reduction <add>, %51, %cst_21 [1] : vector<16x16xf32> to vector<16xf32>
    %53 = vector.shape_cast %52 : vector<16xf32> to vector<16x1xf32>
    %54 = tpu.reciprocal %53 {approx = true} : vector<16x1xf32> -> vector<16x1xf32>
    %55 = vector.broadcast %54 : vector<16x1xf32> to vector<16x16xf32>
    %56 = arith.mulf %51, %55 : vector<16x16xf32>
    %57 = arith.truncf %56 : vector<16x16xf32> to vector<16x16xbf16>
    %58 = vector.extract_strided_slice %43 {offsets = [0, 0], sizes = [16, 8], strides = [1, 1]} : vector<16x32xbf16> to vector<16x8xbf16>
    %cst_22 = arith.constant dense<0.000000e+00> : vector<16x8xf32>
    %59 = tpu.matmul %57, %58, %cst_22 {dimension_numbers = #tpu.dot_dimension_numbers<[1], [0], [0], [1], [0, 0, 1, 1], [], []>} : vector<16x16xbf16>, vector<16x8xbf16>, vector<16x8xf32> -> vector<16x8xf32>
    %60 = vector.extract_strided_slice %39 {offsets = [0, 8], sizes = [16, 8], strides = [1, 1]} : vector<16x32xbf16> to vector<16x8xbf16>
    %61 = vector.extract_strided_slice %41 {offsets = [0, 8], sizes = [16, 8], strides = [1, 1]} : vector<16x32xbf16> to vector<16x8xbf16>
    "tpu.trace_start"() <{level = 10 : i32, message = "nd,md->nm"}> : () -> ()
    %cst_23 = arith.constant dense<0.000000e+00> : vector<16x16xf32>
    %62 = tpu.matmul %60, %61, %cst_23 {dimension_numbers = #tpu.dot_dimension_numbers<[1], [1], [0], [0], [0, 0, 1, 0], [], []>} : vector<16x8xbf16>, vector<16x8xbf16>, vector<16x16xf32> -> vector<16x16xf32>
    "tpu.trace_stop"() : () -> ()
    %cst_24 = arith.constant dense<0xFF800000> : vector<16xf32>
    %63 = vector.multi_reduction <maximumf>, %62, %cst_24 [1] : vector<16x16xf32> to vector<16xf32>
    %64 = vector.shape_cast %63 : vector<16xf32> to vector<16x1xf32>
    %65 = vector.broadcast %64 : vector<16x1xf32> to vector<16x16xf32>
    %66 = arith.subf %62, %65 : vector<16x16xf32>
    %67 = math.exp %66 : vector<16x16xf32>
    %cst_25 = arith.constant dense<0.000000e+00> : vector<16xf32>
    %68 = vector.multi_reduction <add>, %67, %cst_25 [1] : vector<16x16xf32> to vector<16xf32>
    %69 = vector.shape_cast %68 : vector<16xf32> to vector<16x1xf32>
    %70 = tpu.reciprocal %69 {approx = true} : vector<16x1xf32> -> vector<16x1xf32>
    %71 = vector.broadcast %70 : vector<16x1xf32> to vector<16x16xf32>
    %72 = arith.mulf %67, %71 : vector<16x16xf32>
    %73 = arith.truncf %72 : vector<16x16xf32> to vector<16x16xbf16>
    %74 = vector.extract_strided_slice %43 {offsets = [0, 8], sizes = [16, 8], strides = [1, 1]} : vector<16x32xbf16> to vector<16x8xbf16>
    %cst_26 = arith.constant dense<0.000000e+00> : vector<16x8xf32>
    %75 = tpu.matmul %73, %74, %cst_26 {dimension_numbers = #tpu.dot_dimension_numbers<[1], [0], [0], [1], [0, 0, 1, 1], [], []>} : vector<16x16xbf16>, vector<16x8xbf16>, vector<16x8xf32> -> vector<16x8xf32>
    %76 = vector.extract_strided_slice %39 {offsets = [0, 16], sizes = [16, 8], strides = [1, 1]} : vector<16x32xbf16> to vector<16x8xbf16>
    %77 = vector.extract_strided_slice %41 {offsets = [0, 16], sizes = [16, 8], strides = [1, 1]} : vector<16x32xbf16> to vector<16x8xbf16>
    "tpu.trace_start"() <{level = 10 : i32, message = "nd,md->nm"}> : () -> ()
    %cst_27 = arith.constant dense<0.000000e+00> : vector<16x16xf32>
    %78 = tpu.matmul %76, %77, %cst_27 {dimension_numbers = #tpu.dot_dimension_numbers<[1], [1], [0], [0], [0, 0, 1, 0], [], []>} : vector<16x8xbf16>, vector<16x8xbf16>, vector<16x16xf32> -> vector<16x16xf32>
    "tpu.trace_stop"() : () -> ()
    %cst_28 = arith.constant dense<0xFF800000> : vector<16xf32>
    %79 = vector.multi_reduction <maximumf>, %78, %cst_28 [1] : vector<16x16xf32> to vector<16xf32>
    %80 = vector.shape_cast %79 : vector<16xf32> to vector<16x1xf32>
    %81 = vector.broadcast %80 : vector<16x1xf32> to vector<16x16xf32>
    %82 = arith.subf %78, %81 : vector<16x16xf32>
    %83 = math.exp %82 : vector<16x16xf32>
    %cst_29 = arith.constant dense<0.000000e+00> : vector<16xf32>
    %84 = vector.multi_reduction <add>, %83, %cst_29 [1] : vector<16x16xf32> to vector<16xf32>
    %85 = vector.shape_cast %84 : vector<16xf32> to vector<16x1xf32>
    %86 = tpu.reciprocal %85 {approx = true} : vector<16x1xf32> -> vector<16x1xf32>
    %87 = vector.broadcast %86 : vector<16x1xf32> to vector<16x16xf32>
    %88 = arith.mulf %83, %87 : vector<16x16xf32>
    %89 = arith.truncf %88 : vector<16x16xf32> to vector<16x16xbf16>
    %90 = vector.extract_strided_slice %43 {offsets = [0, 16], sizes = [16, 8], strides = [1, 1]} : vector<16x32xbf16> to vector<16x8xbf16>
    %cst_30 = arith.constant dense<0.000000e+00> : vector<16x8xf32>
    %91 = tpu.matmul %89, %90, %cst_30 {dimension_numbers = #tpu.dot_dimension_numbers<[1], [0], [0], [1], [0, 0, 1, 1], [], []>} : vector<16x16xbf16>, vector<16x8xbf16>, vector<16x8xf32> -> vector<16x8xf32>
    %92 = vector.extract_strided_slice %39 {offsets = [0, 24], sizes = [16, 8], strides = [1, 1]} : vector<16x32xbf16> to vector<16x8xbf16>
    %93 = vector.extract_strided_slice %41 {offsets = [0, 24], sizes = [16, 8], strides = [1, 1]} : vector<16x32xbf16> to vector<16x8xbf16>
    "tpu.trace_start"() <{level = 10 : i32, message = "nd,md->nm"}> : () -> ()
    %cst_31 = arith.constant dense<0.000000e+00> : vector<16x16xf32>
    %94 = tpu.matmul %92, %93, %cst_31 {dimension_numbers = #tpu.dot_dimension_numbers<[1], [1], [0], [0], [0, 0, 1, 0], [], []>} : vector<16x8xbf16>, vector<16x8xbf16>, vector<16x16xf32> -> vector<16x16xf32>
    "tpu.trace_stop"() : () -> ()
    %cst_32 = arith.constant dense<0xFF800000> : vector<16xf32>
    %95 = vector.multi_reduction <maximumf>, %94, %cst_32 [1] : vector<16x16xf32> to vector<16xf32>
    %96 = vector.shape_cast %95 : vector<16xf32> to vector<16x1xf32>
    %97 = vector.broadcast %96 : vector<16x1xf32> to vector<16x16xf32>
    %98 = arith.subf %94, %97 : vector<16x16xf32>
    %99 = math.exp %98 : vector<16x16xf32>
    %cst_33 = arith.constant dense<0.000000e+00> : vector<16xf32>
    %100 = vector.multi_reduction <add>, %99, %cst_33 [1] : vector<16x16xf32> to vector<16xf32>
    %101 = vector.shape_cast %100 : vector<16xf32> to vector<16x1xf32>
    %102 = tpu.reciprocal %101 {approx = true} : vector<16x1xf32> -> vector<16x1xf32>
    %103 = vector.broadcast %102 : vector<16x1xf32> to vector<16x16xf32>
    %104 = arith.mulf %99, %103 : vector<16x16xf32>
    %105 = arith.truncf %104 : vector<16x16xf32> to vector<16x16xbf16>
    %106 = vector.extract_strided_slice %43 {offsets = [0, 24], sizes = [16, 8], strides = [1, 1]} : vector<16x32xbf16> to vector<16x8xbf16>
    %cst_34 = arith.constant dense<0.000000e+00> : vector<16x8xf32>
    %107 = tpu.matmul %105, %106, %cst_34 {dimension_numbers = #tpu.dot_dimension_numbers<[1], [0], [0], [1], [0, 0, 1, 1], [], []>} : vector<16x16xbf16>, vector<16x8xbf16>, vector<16x8xf32> -> vector<16x8xf32>
    %108 = tpu.concatenate %59, %75, %91, %107 in 1 : vector<16x8xf32>, vector<16x8xf32>, vector<16x8xf32>, vector<16x8xf32> -> vector<16x32xf32>
    %109 = arith.truncf %108 : vector<16x32xf32> to vector<16x32xbf16>
    %c0_35 = arith.constant 0 : index
    %c0_36 = arith.constant 0 : index
    %c0_37 = arith.constant 0 : index
    %110 = vector.load %arg9[%c0_35, %c0_36, %c0_37] : memref<1x32x32xbf16, #tpu.memory_space<vmem>>, vector<1x32x32xbf16>
    %111 = vector.shape_cast %110 : vector<1x32x32xbf16> to vector<32x32xbf16>
    %cst_38 = arith.constant dense<0.000000e+00> : vector<16x32xf32>
    %112 = tpu.matmul %109, %111, %cst_38 {dimension_numbers = #tpu.dot_dimension_numbers<[1], [0], [0], [1], [0, 0, 1, 1], [], []>} : vector<16x32xbf16>, vector<32x32xbf16>, vector<16x32xf32> -> vector<16x32xf32>
    %c0_39 = arith.constant 0 : index
    %c0_40 = arith.constant 0 : index
    %c0_41 = arith.constant 0 : index
    %113 = vector.load %arg10[%c0_39, %c0_40, %c0_41] : memref<1x1x32xf32, #tpu.memory_space<vmem>>, vector<1x1x32xf32>
    %114 = vector.shape_cast %113 : vector<1x1x32xf32> to vector<1x32xf32>
    %115 = vector.broadcast %114 : vector<1x32xf32> to vector<16x32xf32>
    %116 = arith.addf %112, %115 : vector<16x32xf32>
    %117 = arith.addf %3, %116 : vector<16x32xf32>
    %c0_42 = arith.constant 0 : index
    %c0_43 = arith.constant 0 : index
    %c0_44 = arith.constant 0 : index
    %118 = vector.load %arg11[%c0_42, %c0_43, %c0_44] : memref<1x1x32xf32, #tpu.memory_space<vmem>>, vector<1x1x32xf32>
    %119 = vector.shape_cast %118 : vector<1x1x32xf32> to vector<1x32xf32>
    %c0_45 = arith.constant 0 : index
    %c0_46 = arith.constant 0 : index
    %c0_47 = arith.constant 0 : index
    %120 = vector.load %arg12[%c0_45, %c0_46, %c0_47] : memref<1x1x32xf32, #tpu.memory_space<vmem>>, vector<1x1x32xf32>
    %121 = vector.shape_cast %120 : vector<1x1x32xf32> to vector<1x32xf32>
    %cst_48 = arith.constant dense<0.000000e+00> : vector<16xf32>
    %122 = vector.multi_reduction <add>, %117, %cst_48 [1] : vector<16x32xf32> to vector<16xf32>
    %123 = vector.shape_cast %122 : vector<16xf32> to vector<16x1xf32>
    %cst_49 = arith.constant 3.200000e+01 : f32
    %124 = vector.broadcast %cst_49 : f32 to vector<16x1xf32>
    %125 = arith.divf %123, %124 : vector<16x1xf32>
    %126 = vector.broadcast %125 : vector<16x1xf32> to vector<16x32xf32>
    %127 = arith.subf %117, %126 : vector<16x32xf32>
    %128 = arith.mulf %127, %127 : vector<16x32xf32>
    %cst_50 = arith.constant dense<0.000000e+00> : vector<16xf32>
    %129 = vector.multi_reduction <add>, %128, %cst_50 [1] : vector<16x32xf32> to vector<16xf32>
    %130 = vector.shape_cast %129 : vector<16xf32> to vector<16x1xf32>
    %cst_51 = arith.constant 3.200000e+01 : f32
    %131 = vector.broadcast %cst_51 : f32 to vector<16x1xf32>
    %132 = arith.divf %130, %131 : vector<16x1xf32>
    %133 = vector.broadcast %125 : vector<16x1xf32> to vector<16x32xf32>
    %134 = arith.subf %117, %133 : vector<16x32xf32>
    %cst_52 = arith.constant 9.99999974E-6 : f32
    %135 = vector.broadcast %cst_52 : f32 to vector<16x1xf32>
    %136 = arith.addf %132, %135 : vector<16x1xf32>
    %137 = math.rsqrt %136 : vector<16x1xf32>
    %138 = vector.broadcast %137 : vector<16x1xf32> to vector<16x32xf32>
    %139 = arith.mulf %134, %138 : vector<16x32xf32>
    %140 = vector.broadcast %119 : vector<1x32xf32> to vector<16x32xf32>
    %141 = arith.mulf %139, %140 : vector<16x32xf32>
    %142 = vector.broadcast %121 : vector<1x32xf32> to vector<16x32xf32>
    %143 = arith.addf %141, %142 : vector<16x32xf32>
    %144 = arith.truncf %143 : vector<16x32xf32> to vector<16x32xbf16>
    %c0_53 = arith.constant 0 : index
    %c0_54 = arith.constant 0 : index
    %c0_55 = arith.constant 0 : index
    %145 = vector.load %arg13[%c0_53, %c0_54, %c0_55] : memref<1x32x64xbf16, #tpu.memory_space<vmem>>, vector<1x32x64xbf16>
    %146 = vector.shape_cast %145 : vector<1x32x64xbf16> to vector<32x64xbf16>
    %cst_56 = arith.constant dense<0.000000e+00> : vector<16x64xf32>
    %147 = tpu.matmul %144, %146, %cst_56 {dimension_numbers = #tpu.dot_dimension_numbers<[1], [0], [0], [1], [0, 0, 1, 1], [], []>} : vector<16x32xbf16>, vector<32x64xbf16>, vector<16x64xf32> -> vector<16x64xf32>
    %c0_57 = arith.constant 0 : index
    %c0_58 = arith.constant 0 : index
    %c0_59 = arith.constant 0 : index
    %148 = vector.load %arg14[%c0_57, %c0_58, %c0_59] : memref<1x1x64xf32, #tpu.memory_space<vmem>>, vector<1x1x64xf32>
    %149 = vector.shape_cast %148 : vector<1x1x64xf32> to vector<1x64xf32>
    %150 = vector.broadcast %149 : vector<1x64xf32> to vector<16x64xf32>
    %151 = arith.addf %147, %150 : vector<16x64xf32>
    %152 = arith.mulf %151, %151 : vector<16x64xf32>
    %153 = arith.mulf %151, %152 : vector<16x64xf32>
    %cst_60 = arith.constant 4.471500e-02 : f32
    %154 = vector.broadcast %cst_60 : f32 to vector<16x64xf32>
    %155 = arith.mulf %154, %153 : vector<16x64xf32>
    %156 = arith.addf %151, %155 : vector<16x64xf32>
    %cst_61 = arith.constant 0.797884583 : f32
    %157 = vector.broadcast %cst_61 : f32 to vector<16x64xf32>
    %158 = arith.mulf %157, %156 : vector<16x64xf32>
    %159 = math.tanh %158 : vector<16x64xf32>
    %cst_62 = arith.constant 1.000000e+00 : f32
    %160 = vector.broadcast %cst_62 : f32 to vector<16x64xf32>
    %161 = arith.addf %160, %159 : vector<16x64xf32>
    %cst_63 = arith.constant 5.000000e-01 : f32
    %162 = vector.broadcast %cst_63 : f32 to vector<16x64xf32>
    %163 = arith.mulf %162, %161 : vector<16x64xf32>
    %164 = arith.mulf %151, %163 : vector<16x64xf32>
    %165 = arith.truncf %164 : vector<16x64xf32> to vector<16x64xbf16>
    %c0_64 = arith.constant 0 : index
    %c0_65 = arith.constant 0 : index
    %c0_66 = arith.constant 0 : index
    %166 = vector.load %arg15[%c0_64, %c0_65, %c0_66] : memref<1x64x32xbf16, #tpu.memory_space<vmem>>, vector<1x64x32xbf16>
    %167 = vector.shape_cast %166 : vector<1x64x32xbf16> to vector<64x32xbf16>
    %cst_67 = arith.constant dense<0.000000e+00> : vector<16x32xf32>
    %168 = tpu.matmul %165, %167, %cst_67 {dimension_numbers = #tpu.dot_dimension_numbers<[1], [0], [0], [1], [0, 0, 1, 1], [], []>} : vector<16x64xbf16>, vector<64x32xbf16>, vector<16x32xf32> -> vector<16x32xf32>
    %c0_68 = arith.constant 0 : index
    %c0_69 = arith.constant 0 : index
    %c0_70 = arith.constant 0 : index
    %169 = vector.load %arg16[%c0_68, %c0_69, %c0_70] : memref<1x1x32xf32, #tpu.memory_space<vmem>>, vector<1x1x32xf32>
    %170 = vector.shape_cast %169 : vector<1x1x32xf32> to vector<1x32xf32>
    %171 = vector.broadcast %170 : vector<1x32xf32> to vector<16x32xf32>
    %172 = arith.addf %168, %171 : vector<16x32xf32>
    %173 = arith.addf %117, %172 : vector<16x32xf32>
    %c0_71 = arith.constant 0 : index
    %c0_72 = arith.constant 0 : index
    %174 = vector.load %arg20[%c0_71, %c0_72] : memref<16x32xf32, #tpu.memory_space<vmem>>, vector<16x32xf32>
    tpu.vector_store %arg20[%c0_71, %c0_72], %173 {strides = array<i32>} : memref<16x32xf32, #tpu.memory_space<vmem>>, vector<16x32xf32>,
    %c1_i32 = arith.constant 1 : i32
    %175 = arith.cmpi eq, %arg1, %c1_i32 : i32
    %176 = arith.extui %175 : i1 to i32
    %c0_i32_73 = arith.constant 0 : i32
    %177 = arith.cmpi ne, %176, %c0_i32_73 : i32
    scf.if %177 {
      %cst_74 = arith.constant dense<0.000000e+00> : vector<32xf32>
      %178 = vector.multi_reduction <add>, %173, %cst_74 [0] : vector<16x32xf32> to vector<32xf32>
      %179 = vector.shape_cast %178 : vector<32xf32> to vector<1x32xf32>
      %cst_75 = arith.constant 1.600000e+01 : f32
      %180 = vector.broadcast %cst_75 : f32 to vector<1x32xf32>
      %181 = arith.divf %179, %180 : vector<1x32xf32>
      %182 = arith.truncf %181 : vector<1x32xf32> to vector<1x32xbf16>
      %c0_76 = arith.constant 0 : index
      %c0_77 = arith.constant 0 : index
      %183 = vector.load %arg17[%c0_76, %c0_77] : memref<32x128xbf16, #tpu.memory_space<vmem>>, vector<32x128xbf16>
      %cst_78 = arith.constant dense<0.000000e+00> : vector<1x128xf32>
      %184 = tpu.matmul %182, %183, %cst_78 {dimension_numbers = #tpu.dot_dimension_numbers<[1], [0], [0], [1], [0, 0, 1, 1], [], []>} : vector<1x32xbf16>, vector<32x128xbf16>, vector<1x128xf32> -> vector<1x128xf32>
      %c0_79 = arith.constant 0 : index
      %c0_80 = arith.constant 0 : index
      %185 = vector.load %arg18[%c0_79, %c0_80] : memref<1x128xf32, #tpu.memory_space<vmem>>, vector<1x128xf32>
      %186 = arith.addf %184, %185 : vector<1x128xf32>
      %c0_81 = arith.constant 0 : index
      %c0_82 = arith.constant 0 : index
      %c0_83 = arith.constant 0 : index
      %187 = vector.load %arg19[%c0_81, %c0_82, %c0_83] : memref<1x1x128xf32, #tpu.memory_space<vmem>>, vector<1x1x128xf32>
      %188 = vector.shape_cast %187 : vector<1x1x128xf32> to vector<1x128xf32>
      %189 = vector.shape_cast %186 : vector<1x128xf32> to vector<1x1x128xf32>
      tpu.vector_store %arg19[%c0_81, %c0_82, %c0_83], %189 {strides = array<i32>} : memref<1x1x128xf32, #tpu.memory_space<vmem>>, vector<1x1x128xf32>,
    } else {
    }
    return
  }
  func.func @transform_0(%arg0: i32, %arg1: i32) -> (i32, i32, i32) {
    %c0_i32 = arith.constant 0 : i32
    %c0_i32_0 = arith.constant 0 : i32
    %c0_i32_1 = arith.constant 0 : i32
    return %arg0, %c0_i32, %c0_i32_0 : i32, i32, i32
  }
  func.func @transform_1(%arg0: i32, %arg1: i32) -> (i32, i32) {
    %c0_i32 = arith.constant 0 : i32
    %c0_i32_0 = arith.constant 0 : i32
    %c0_i32_1 = arith.constant 0 : i32
    return %c0_i32, %c0_i32_0 : i32, i32
  }
  func.func @transform_2(%arg0: i32, %arg1: i32) -> (i32, i32) {
    %c0_i32 = arith.constant 0 : i32
    %c0_i32_0 = arith.constant 0 : i32
    %c0_i32_1 = arith.constant 0 : i32
    return %c0_i32, %c0_i32_0 : i32, i32
  }
  func.func @transform_3(%arg0: i32, %arg1: i32) -> (i32, i32, i32) {
    %c0_i32 = arith.constant 0 : i32
    %c0_i32_0 = arith.constant 0 : i32
    %c0_i32_1 = arith.constant 0 : i32
    return %arg1, %c0_i32, %c0_i32_0 : i32, i32, i32
  }
  func.func @transform_4(%arg0: i32, %arg1: i32) -> (i32, i32, i32) {
    %c0_i32 = arith.constant 0 : i32
    %c0_i32_0 = arith.constant 0 : i32
    %c0_i32_1 = arith.constant 0 : i32
    return %arg1, %c0_i32, %c0_i32_0 : i32, i32, i32
  }
  func.func @transform_5(%arg0: i32, %arg1: i32) -> (i32, i32, i32) {
    %c0_i32 = arith.constant 0 : i32
    %c0_i32_0 = arith.constant 0 : i32
    %c0_i32_1 = arith.constant 0 : i32
    return %arg1, %c0_i32, %c0_i32_0 : i32, i32, i32
  }
  func.func @transform_6(%arg0: i32, %arg1: i32) -> (i32, i32, i32) {
    %c0_i32 = arith.constant 0 : i32
    %c0_i32_0 = arith.constant 0 : i32
    %c0_i32_1 = arith.constant 0 : i32
    return %arg1, %c0_i32, %c0_i32_0 : i32, i32, i32
  }
  func.func @transform_7(%arg0: i32, %arg1: i32) -> (i32, i32, i32) {
    %c0_i32 = arith.constant 0 : i32
    %c0_i32_0 = arith.constant 0 : i32
    %c0_i32_1 = arith.constant 0 : i32
    return %arg1, %c0_i32, %c0_i32_0 : i32, i32, i32
  }
  func.func @transform_8(%arg0: i32, %arg1: i32) -> (i32, i32, i32) {
    %c0_i32 = arith.constant 0 : i32
    %c0_i32_0 = arith.constant 0 : i32
    %c0_i32_1 = arith.constant 0 : i32
    return %arg1, %c0_i32, %c0_i32_0 : i32, i32, i32
  }
  func.func @transform_9(%arg0: i32, %arg1: i32) -> (i32, i32, i32) {
    %c0_i32 = arith.constant 0 : i32
    %c0_i32_0 = arith.constant 0 : i32
    %c0_i32_1 = arith.constant 0 : i32
    return %arg1, %c0_i32, %c0_i32_0 : i32, i32, i32
  }
  func.func @transform_10(%arg0: i32, %arg1: i32) -> (i32, i32, i32) {
    %c0_i32 = arith.constant 0 : i32
    %c0_i32_0 = arith.constant 0 : i32
    %c0_i32_1 = arith.constant 0 : i32
    return %arg1, %c0_i32, %c0_i32_0 : i32, i32, i32
  }
  func.func @transform_11(%arg0: i32, %arg1: i32) -> (i32, i32, i32) {
    %c0_i32 = arith.constant 0 : i32
    %c0_i32_0 = arith.constant 0 : i32
    %c0_i32_1 = arith.constant 0 : i32
    return %arg1, %c0_i32, %c0_i32_0 : i32, i32, i32
  }
  func.func @transform_12(%arg0: i32, %arg1: i32) -> (i32, i32, i32) {
    %c0_i32 = arith.constant 0 : i32
    %c0_i32_0 = arith.constant 0 : i32
    %c0_i32_1 = arith.constant 0 : i32
    return %arg1, %c0_i32, %c0_i32_0 : i32, i32, i32
  }
  func.func @transform_13(%arg0: i32, %arg1: i32) -> (i32, i32, i32) {
    %c0_i32 = arith.constant 0 : i32
    %c0_i32_0 = arith.constant 0 : i32
    %c0_i32_1 = arith.constant 0 : i32
    return %arg1, %c0_i32, %c0_i32_0 : i32, i32, i32
  }
  func.func @transform_14(%arg0: i32, %arg1: i32) -> (i32, i32, i32) {
    %c0_i32 = arith.constant 0 : i32
    %c0_i32_0 = arith.constant 0 : i32
    %c0_i32_1 = arith.constant 0 : i32
    return %arg1, %c0_i32, %c0_i32_0 : i32, i32, i32
  }
  func.func @transform_15(%arg0: i32, %arg1: i32) -> (i32, i32) {
    %c0_i32 = arith.constant 0 : i32
    %c0_i32_0 = arith.constant 0 : i32
    %c0_i32_1 = arith.constant 0 : i32
    return %c0_i32, %c0_i32_0 : i32, i32
  }
  func.func @transform_16(%arg0: i32, %arg1: i32) -> (i32, i32) {
    %c0_i32 = arith.constant 0 : i32
    %c0_i32_0 = arith.constant 0 : i32
    %c0_i32_1 = arith.constant 0 : i32
    return %c0_i32, %c0_i32_0 : i32, i32
  }
  func.func @transform_17(%arg0: i32, %arg1: i32) -> (i32, i32, i32) {
    %c0_i32 = arith.constant 0 : i32
    %c0_i32_0 = arith.constant 0 : i32
    %c0_i32_1 = arith.constant 0 : i32
    return %arg0, %c0_i32, %c0_i32_0 : i32, i32, i32
  }
}

</mosaic_0001>

<bundles_post_ra>
// kernel: mfvit_forward.1
= control target key start
LH: loop header
LB: loop body
LE: loop exit
PB: predicated region body
PF: predicated region fallthrough
CT: control target
= control target key end

     0   :  { %s3020_s0 = inlined_call_operand.vmem [shape: bf16[2,16,64], index: 0, kind: input, shape index: {}]   ;;  %s3021_s1 = inlined_call_operand.vmem [shape: bf16[64,32], index: 1, kind: input, shape index: {}]   ;;  %s3022_s2 = inlined_call_operand.vmem [shape: f32[16,32], index: 2, kind: input, shape index: {}]   ;;  %s3023_s3 = inlined_call_operand.vmem [shape: f32[2,1,32], index: 3, kind: input, shape index: {}]   ;;  %s3024_s4 = inlined_call_operand.vmem [shape: f32[2,1,32], index: 4, kind: input, shape index: {}]   ;;  %s3025_s5 = inlined_call_operand.vmem [shape: bf16[2,32,96], index: 5, kind: input, shape index: {}]   ;;  %s3026_s6 = inlined_call_operand.vmem [shape: f32[2,1,96], index: 6, kind: input, shape index: {}]   ;;  %s3027_s7 = inlined_call_operand.vmem [shape: bf16[2,32,32], index: 7, kind: input, shape index: {}]   ;;  %s3028_s8 = inlined_call_operand.vmem [shape: f32[2,1,32], index: 8, kind: input, shape index: {}]   ;;  %s3029_s9 = inlined_call_operand.vmem [shape: f32[2,1,32], index: 9, kind: input, shape index: {}]   ;;  %s3030_s10 = inlined_call_operand.vmem [shape: f32[2,1,32], index: 10, kind: input, shape index: {}]   ;;  %s3031_s11 = inlined_call_operand.vmem [shape: bf16[2,32,64], index: 11, kind: input, shape index: {}]   ;;  %s3032_s12 = inlined_call_operand.vmem [shape: f32[2,1,64], index: 12, kind: input, shape index: {}]   ;;  %s3033_s13 = inlined_call_operand.vmem [shape: bf16[2,64,32], index: 13, kind: input, shape index: {}]   ;;  %s3034_s14 = inlined_call_operand.vmem [shape: f32[2,1,32], index: 14, kind: input, shape index: {}]   ;;  %s3035_s15 = inlined_call_operand.vmem [shape: bf16[32,128], index: 15, kind: input, shape index: {}]   ;;  %s3036_s16 = inlined_call_operand.vmem [shape: f32[1,128], index: 16, kind: input, shape index: {}]   ;;  %s3037_s17 = inlined_call_operand.hbm [shape: f32[2,1,128], index: 17, kind: output, shape index: {}]  }
   0x1   :  { %3054 = sst [smem:[#allocation18_spill]] %s3020_s0 }
   0x2   :  { %3055 = sst [smem:[#allocation19_spill]] %s3021_s1 }
   0x3   :  { %3056 = sst [smem:[#allocation20_spill]] %s3022_s2 }
   0x4   :  { %3057 = sst [smem:[#allocation21_spill]] %s3024_s4 }
   0x5   :  { %3058 = sst [smem:[#allocation22_spill]] %s3025_s5 }
   0x6   :  { %3059 = sst [smem:[#allocation23_spill]] %s3027_s7 }
   0x7   :  { %3060 = sst [smem:[#allocation24_spill]] %s3035_s15 }
   0x8   :  { %3061 = sst [smem:[#allocation25_spill]] %s3036_s16 }
   0x9   :  { %3062 = sst [smem:[#allocation26_spill]] %s3037_s17 }
   0xa   :  { %22 = vsyncpa [#allocation4], 0 }
   0xb   :  { %24 = vsyncpa [#allocation4 + $0x1], 0  ;;  %s2622_s24 = smov 0   ;;  %s2624_s25 = smov 0  }
   0xc   :  { %s2626_s26 = smov 0   ;;  %s2628_s27 = smov 0  }
   0xd   :  { %s2630_s28 = smov 0   ;;  %s2632_s29 = smov 0  }
   0xe   :  { %s2634_s0 = smov 0   ;;  %s2636_s30 = smov 0  }
   0xf LB: > { %3063 = sst [smem:[#allocation6_spill]] %s2481_s24  ;;  %s2042_s18 = sadd.s32 4294967295, %s2509_s30   ;;  %s2509_s30 = sphi %s2636_s30, %s30_s30   ;;  %s2505_s0 = sphi %s2634_s0, %s3108_s0   ;;  %s2501_s29 = sphi %s2632_s29, %s3107_s29   ;;  %s2497_s28 = sphi %s2630_s28, %s3106_s28   ;;  %s2493_s27 = sphi %s2628_s27, %s3105_s27   ;;  %s2489_s26 = sphi %s2626_s26, %s3104_s26   ;;  %s2485_s25 = sphi %s2624_s25, %s3110_s25   ;;  %s2481_s24 = sphi %s2622_s24, %s3109_s24  }
  0x10   : > { %3064 = sst [smem:[#allocation7_spill]] %s2489_s26  ;;  %s2043_s19 = sadd.s32 4294967294, %s2509_s30  }
  0x11   : > { %3065 = sst [smem:[#allocation8_spill]] %s2493_s27  ;;  %s39_s1 = sadd.s32 1, %s2501_s29 }
  0x12   : > { %3066 = sst [smem:[#allocation9_spill]] %s2497_s28  ;;  %p40_p0 = scmp.ge.s32.totalorder %s39_s1, 2 }
  0x13   : > { %3067 = sst [smem:[#allocation10_spill]] %s2501_s29  ;;  %s42_s20 = sadd.s32 1, %s2505_s0 }
  0x14   : > { %3068 = sst [smem:[#allocation11_spill]] %s2505_s0  ;;  %p481_p1 = scmp.ne.s32.totalorder %s2489_s26, %s2485_s25 }
  0x15   : > { %3069 = sst [smem:[#allocation12_spill]] %s2509_s30  ;;  %p482_p2 = scmp.eq.s32.totalorder %s2042_s18, 3 }
  0x16   : > { %s3112_s1 = smov (%p40_p0, %s39_s1), 0  ;;  %s3114_s20 = smov (!%p40_p0, %s42_s20), %s2505_s0 }
  0x17   : > { %3070 = sst [smem:[#allocation13_spill]] %s3112_s1  ;;  %p2671_p3 = por %p482_p2, %p481_p1 }
  0x18   : > { %p487_p4 = scmp.ne.s32.totalorder %s2485_s25, %s2481_s24  ;;  %p44_p5 = scmp.ge.s32.totalorder %s3114_s20, 2 }
  0x19   : > { %s3071_s21 = scalar_select %p2671_p3, 1, 0 }
  0x1a   : > { %p488_p6 = scmp.eq.s32.totalorder %s2043_s19, 3  ;;  %p2046_p7 = scmp.ge.s32.totalorder %s2509_s30, 1 }
  0x1b   : > { %3072 = sst [smem:[#allocation14_spill]] %s3071_s21  ;;  %p606_p8 = scmp.lt.s32.totalorder %s2509_s30, 5 }
  0x1c   : > { %s3116_s20 = smov (%p44_p5, %s3114_s20), 0  ;;  %p2681_p9 = por %p488_p6, %p487_p4 }
  0x1d   : > { %3073 = sst [smem:[#allocation15_spill]] %s3116_s20  ;;  %p607_p10 = pnand %p2046_p7, %p606_p8 }
  0x1e   : > { %s3074_s22 = scalar_select %p2681_p9, 1, 0 }
  0x1f   : > { %s468_s23 = ssub.s32 %s2505_s0, %s3116_s20  ;;  %s471_s18 = sadd.s32 1, %s2489_s26 }
  0x20   : > { %3075 = sst [smem:[#allocation16_spill]] %s3074_s22  ;;  %p469_p11 = scmp.eq.s32.totalorder %s468_s23, 0 }
  0x21   : > { %610 = sbr.rel (%p607_p10) target bundleno = 3110 (0xc26), region = 88  ;;  %p701_p12 = scmp.lt.s32.totalorder (!%p607_p10), %s2497_s28, 1 }
  0x22   : > { %s2689_s1 = scalar_select %p469_p11, %s2489_s26, %s471_s18  }
  0x23   : > { %p706_p13 = scmp.lt.s32.totalorder (!%p607_p10), %s2493_s27, 1  ;;  %s3077_s0 = sld [smem:[#allocation18_spill]] (!%p607_p10) }
  0x24   : > { %3076 = sst [smem:[#allocation17_spill]] %s2689_s1  ;;  %s3079_s5 = sld [smem:[#allocation22_spill]] (!%p607_p10) }
  0x25   : > { %s3080_s7 = sld [smem:[#allocation23_spill]] (!%p607_p10)  ;;  %s3081_s15 = sand.u32 (!%p607_p10), 1, %s2485_s25  }
  0x26   : > { %s2759_s16 = scalar_lea.vmem (!%p607_p10), [#allocation3], %s3081_s15  ;;  %s3082_s4 = sld [smem:[#allocation8_spill]] (!%p607_p10) }
  0x28   : > { %s702_s29 = scalar_select %p701_p12, %s2497_s28, 1 }
  0x29   : > { %s2696_s24 = scalar_select %p706_p13, %s2493_s27, 1 }
  0x2a   : > { %s2101_s23 = sshll.u32 %s702_s29, 3 }
  0x2b   : > { %s2701_s19 = scalar_lea.vmem %s3077_s0, %s2101_s23  ;;  %s2102_s28 = sshll.u32 %s2696_s24, 4 }
  0x2c   : > { %s2715_s2 = scalar_lea.vmem %s3079_s5, %s2102_s28  ;;  %s2724_s18 = scalar_lea.vmem %s3080_s7, %s2102_s28 }
  0x2d   : > { %s733_s5 = scalar_lea.vmem %s3030_s10, %s2696_s24  ;;  %s2741_s29 = scalar_lea.vmem %s3031_s11, %s2102_s28 }
  0x2e   : > { %s741_s20 = scalar_lea.vmem %s3032_s12, %s2696_s24  ;;  %s2105_s7 = sshll.u32 %s2696_s24, 5 }
  0x2f   : > { %s749_s17 = scalar_lea.vmem %s3034_s14, %s2696_s24  ;;  %s2755_s22 = scalar_lea.vmem %s3033_s13, %s2105_s7 }
  0x30   : > { %p2057_p0 = scmp.ne.s32.totalorder %s3082_s4, 0 }
  0x31   : > { %s3083_s0 = sld [smem:[#allocation19_spill]] (!%p2057_p0)  ;;  %v2511_v1 = vmov (!%p2057_p0), 0.0   ;;  %vm2512_vm0 = vmmov (!%p2057_p0), 0   ;;  %v2343_v5 = vld [vmem:[%s2701_s19] sm:$0xff] (!%p2057_p0)   ;;  %vm796_vm1 = vcmask (!%p2057_p0), 523264   ;;  %s3085_s27 = sld [smem:[#allocation20_spill]] (!%p2057_p0) }
  0x32   : > { %754 = sbr.rel (%p2057_p0) target bundleno = 288 (0x120), region = 92  ;;  %2144 = vmatprep.subr.bf16.mxu0 (!%p2057_p0), %v2511_v1  ;;  %2152 = vmatprep.mubr.msk.bf16.mxu0 (!%p2057_p0), %vm2512_vm0, %v2511_v1  ;;  %vm841_vm2 = vcmask (!%p2057_p0), 261120  }
  0x37   : > { %s3084_s23 = smov (!%p2057_p0), %s3083_s0  ;;  %v2339_v0 = vld [vmem:[%s3083_s0] sm:$0xff] (!%p2057_p0)   ;;  %s3086_s1 = smov (!%p2057_p0), %s3085_s27 }
  0x38   : > { %2145 = vmatpush3.bf16.msra.mxu0 (!%p2057_p0), %v2339_v0  ;;  %v2340_v2 = vld [vmem:[%s3084_s23 + $0x8] sm:$0xff] (!%p2057_p0)   ;;  %v2341_v3 = vld [vmem:[%s3084_s23 + $0x10] sm:$0xff] (!%p2057_p0)   ;;  %v2342_v4 = vld [vmem:[%s3084_s23 + $0x18] sm:$0xff] (!%p2057_p0)  }
  0x39   : > { %2146 = vmatprep.subr.bf16.mxu0 %v2511_v1  ;;  %v765_v6 = vld [vmem:[%s3085_s27] sm:$0xff]  ;;  %v766_v8 = vld [vmem:[%s3086_s1 + $0x8] sm:$0xff] }
  0x3c   : > { %2147 = vmatpush3.bf16.msra.mxu0 %v2340_v2 }
  0x3d   : > { %2148 = vmatprep.subr.bf16.mxu0 %v2511_v1 }
  0x40   : > { %2149 = vmatpush3.bf16.msra.mxu0 %v2341_v3 }
  0x41   : > { %2150 = vmatprep.subr.bf16.mxu0 %v2511_v1 }
  0x44   : > { %2151 = vmatpush3.bf16.msra.mxu0 %v2342_v4 }
  0x47   : > { %2153 = vmatmul.mubr.msk.bf16.vlgmr.msra.gmra.mrb[0].mxu0 %vm796_vm1, %v2343_v5 }
 0x11a   : > { %v834_v7 = vpop.f32.mrb[0].mxu0 }
 0x11b   : > { %v835_v9 = vadd.f32 %v834_v7, %v765_v6  ;;  %v2154_v10 = vpop.f32.mrb[1].mxu0 }
 0x11c   : > { %v837_v11 = vpop.f32.mrb[2].mxu0 }
 0x11d   : > { %842 = vst.msk [vmem:[#allocation2] sm:$0xff] %vm841_vm2, %v835_v9  ;;  %v838_v12 = vadd.f32 %v837_v11, %v766_v8  ;;  %v2155_v13 = vpop.f32.mrb[3].mxu0 }
 0x11f   : > { %843 = vst.msk [vmem:[#allocation2 + $0x8] sm:$0xff] %vm841_vm2, %v838_v12 }
 0x120 PF: > { %vm848_vm3 = vcmask 261120   ;;  %v2359_v28 = vld [vmem:[%s2715_s2] sm:$0xff]   ;;  %v2513_v29 = vmov 0.0   ;;  %v2360_v30 = vld [vmem:[%s2715_s2 + $0x8] sm:$0xff]   ;;  %vm2514_vm4 = vmmov 0   ;;  %s3087_s7 = scalar_lea.vmem %s3023_s3, %s2696_s24  ;;  %s3088_s15 = sld [smem:[#allocation21_spill]] }
 0x121   : > { %2156 = vmatprep.subr.bf16.mxu0 %v2513_v29  ;;  %2164 = vmatprep.subr.bf16.mxu1 %v2513_v29  ;;  %v2064_v39 = vld [vmem:[%s3087_s7] ss:$0 sm:$0xff]  ;;  %s3090_s0 = scalar_lea.vmem %s3026_s6, %s2696_s24  ;;  %s2515_s26 = smov 88   ;;  %vm964_vm5 = vcmask 64512   ;;  %vm1012_vm6 = vcmask 130048   ;;  %vm1474_vm7 = vcmask 195584  }
 0x122   : > { %2157 = vmatpush3.bf16.msra.mxu0 %v2359_v28  ;;  %2160 = vmatprep.mubr.msk.bf16.mxu0 %vm2514_vm4, %v2513_v29  ;;  %v2066_v48 = vld [vmem:[%s3090_s0] ss:$0 sm:$0xff]  ;;  %s2516_s2 = smov 96   ;;  %s2517_s19 = smov 120   ;;  %vm1717_vm8 = vcmask 523264  }
 0x123   : > { %2158 = vmatprep.subr.bf16.mxu0 %v2513_v29  ;;  %2166 = vmatprep.mubr.msk.bf16.mxu1 %vm2514_vm4, %v2513_v29  ;;  %s2518_s7 = smov 112   ;;  %s2519_s21 = smov 80  }
 0x124   : > { %v2781_v14 = vld [vmem:[#allocation2] sm:$0xff]  ;;  %s2520_s30 = smov 104   ;;  %s2523_s28 = smov 48  }
 0x125   : > { %v849_v16 = vsel %vm848_vm3, %v2781_v14, 0.0  ;;  %s2524_s27 = smov 40   ;;  %s2525_s0 = smov 56  }
 0x126   : > { %v2783_v15 = vld [vmem:[#allocation2 + $0x8] sm:$0xff]  ;;  %850 = vadd.xlane.f32.xlu0 %v849_v16  ;;  %2159 = vmatpush3.bf16.msra.mxu0 %v2360_v30  ;;  %s3089_s4 = scalar_lea.vmem %s3088_s15, %s2696_s24  ;;  %s2521_s15 = smov 72  }
 0x127   : > { %v852_v17 = vsel %vm848_vm3, %v2783_v15, 0.0  ;;  %2170 = vmatprep.subr.bf16.mxu0 %v2513_v29  ;;  %v2065_v43 = vld [vmem:[%s3089_s4] ss:$0 sm:$0xff]  ;;  %s2522_s4 = smov 64  }
 0x12a   : > { %853 = vadd.xlane.f32.xlu0 %v852_v17 }
 0x1b3   : > { %v851_v18 = vpop.xlane.xlu0 %850 }
 0x1b4   : > { %v856_v19 = vmul.f32 0.03125, %v851_v18 }
 0x1b6   : > { %v858_v20 = vsub.f32 %v2781_v14, %v856_v19 }
 0x1b7   : > { %v854_v21 = vpop.xlane.xlu0 %853 }
 0x1b8   : > { %v857_v22 = vmul.f32 0.03125, %v854_v21  ;;  %v860_v23 = vmul.f32 %v858_v20, %v858_v20 }
 0x1ba   : > { %v859_v24 = vsub.f32 %v2783_v15, %v857_v22  ;;  %v862_v25 = vsel %vm848_vm3, %v860_v23, 0.0 }
 0x1bb   : > { %863 = vadd.xlane.f32.xlu1 %v862_v25 }
 0x1bc   : > { %v861_v26 = vmul.f32 %v859_v24, %v859_v24 }
 0x1be   : > { %v865_v27 = vsel %vm848_vm3, %v861_v26, 0.0 }
 0x1bf   : > { %866 = vadd.xlane.f32.xlu1 %v865_v27 }
 0x248   : > { %v864_v31 = vpop.xlane.xlu1 %863 }
 0x249   : > { %v868_v32 = vmul.f32 0.03125, %v864_v31 }
 0x24b   : > { %v870_v33 = vadd.f32 1e-05, %v868_v32 }
 0x24c   : > { %v867_v34 = vpop.xlane.xlu1 %866 }
 0x24d   : > { %2369 = vrsqrt.f32 %v870_v33  ;;  %v869_v35 = vmul.f32 0.03125, %v867_v34 }
 0x24f   : > { %v871_v36 = vadd.f32 1e-05, %v869_v35 }
 0x251   : > { %2371 = vrsqrt.f32 %v871_v36 }
 0x257   : > { %v2370_v37 = vpop.eup %2369 }
 0x258   : > { %v874_v38 = vmul.f32 %v2370_v37, %v858_v20 }
 0x25a   : > { %v882_v42 = vmul.f32 %v2064_v39, %v874_v38 }
 0x25b   : > { %v2372_v40 = vpop.eup %2371 }
 0x25c   : > { %v875_v41 = vmul.f32 %v2372_v40, %v859_v24  ;;  %v890_v45 = vadd.f32 %v2065_v43, %v882_v42 }
 0x25e   : > { %v883_v44 = vmul.f32 %v2064_v39, %v875_v41 }
 0x260   : > { %v891_v46 = vadd.f32 %v2065_v43, %v883_v44 }
 0x262   : > { %v892_v47 = vpack.c.bf16 %v891_v46, %v890_v45 }
 0x264   : > { %2161 = vmatmul.mubr.msk.bf16.vlgmr.msra.gmra.mrb[0].mxu0 %vm848_vm3, %v892_v47 }
 0x265   : > { %2172 = vmatprep.mubr.msk.bf16.mxu0 %vm2514_vm4, %v2513_v29 }
 0x337   : > { %v953_v49 = vpop.f32.mrb[0].mxu0 }
 0x338   : > { %v2162_v50 = vpop.f32.mrb[1].mxu0  ;;  %v954_v52 = vadd.f32 %v2066_v48, %v953_v49 }
 0x339   : > { %v956_v51 = vpop.f32.mrb[2].mxu0 }
 0x33a   : > { %v957_v53 = vadd.f32 %v2066_v48, %v956_v51  ;;  %v2163_v54 = vpop.f32.mrb[3].mxu0 }
 0x33c   : > { %v2821_v55 = vpack.c.bf16 %v957_v53, %v954_v52 }
 0x33e   : > { %1085 = vrot.lane.b32.xlu1 %v2821_v55, %s2515_s26  ;;  %962 = vrot.lane.b32.xlu0 %v2821_v55, %s2516_s2  ;;  %s2526_s26 = smov 8   ;;  %s2527_s2 = smov 16  }
 0x342   : > { %1083 = vrot.lane.b32.xlu1 %v2821_v55, %s2517_s19  ;;  %1204 = vrot.lane.b32.xlu0 %v2821_v55, %s2518_s7  ;;  %s2528_s19 = smov 24  }
 0x346   : > { %1206 = vrot.lane.b32.xlu1 %v2821_v55, %s2519_s21  ;;  %1325 = vrot.lane.b32.xlu0 %v2821_v55, %s2520_s30  ;;  %s3091_s21 = scalar_lea.vmem %s3028_s8, %s2696_s24 }
 0x34a   : > { %1327 = vrot.lane.b32.xlu1 %v2821_v55, %s2521_s15 }
 0x3b0   : > { %v963_v56 = vpop.permute.xlu0 %962  ;;  %v1086_v58 = vpop.permute.xlu1 %1085 }
 0x3b1   : > { %v969_v57 = vsel %vm964_vm5, %v963_v56, 0  ;;  %v1091_v60 = vsel %vm964_vm5, %v1086_v58, 0 }
 0x3b2   : > { %2165 = vmatpush3.bf16.xpose.msra.mxu1 %v969_v57 }
 0x3b3   : > { %2176 = vmatprep.subr.bf16.mxu1 %v2513_v29 }
 0x3b4   : > { %v1084_v59 = vpop.permute.xlu1 %1083  ;;  %v1205_v0 = vpop.permute.xlu0 %1204 }
 0x3b8   : > { %v1207_v61 = vpop.permute.xlu1 %1206  ;;  %v1326_v2 = vpop.permute.xlu0 %1325 }
 0x3b9   : > { %2167 = vmatmul.mubr.msk.bf16.vlgmr.msra.gmra.mrb[0].mxu1 %vm964_vm5, %v2821_v55  ;;  %v1212_v62 = vsel %vm964_vm5, %v1207_v61, 0 }
 0x3ba   : > { %2177 = vmatpush3.bf16.xpose.msra.mxu1 %v1091_v60  ;;  %2178 = vmatprep.mubr.msk.bf16.mxu1 %vm2514_vm4, %v2513_v29 }
 0x3bb   : > { %2188 = vmatprep.subr.bf16.mxu1 %v2513_v29 }
 0x3bc   : > { %v1328_v63 = vpop.permute.xlu1 %1327 }
 0x3bd   : > { %v1333_v1 = vsel %vm964_vm5, %v1328_v63, 0 }
 0x3c1   : > { %2179 = vmatmul.mubr.msk.bf16.vlgmr.msra.gmra.mrb[4].mxu1 %vm964_vm5, %v1084_v59 }
 0x3c2   : > { %2189 = vmatpush3.bf16.xpose.msra.mxu1 %v1212_v62  ;;  %2190 = vmatprep.mubr.msk.bf16.mxu1 %vm2514_vm4, %v2513_v29 }
 0x3c3   : > { %2200 = vmatprep.subr.bf16.mxu1 %v2513_v29 }
 0x3c9   : > { %2191 = vmatmul.mubr.msk.bf16.vlgmr.msra.gmra.mrb[8].mxu1 %vm964_vm5, %v1205_v0 }
 0x3ca   : > { %2201 = vmatpush3.bf16.xpose.msra.mxu1 %v1333_v1  ;;  %2202 = vmatprep.mubr.msk.bf16.mxu1 %vm2514_vm4, %v2513_v29 }
 0x3cb   : > { %2212 = vmatprep.subr.bf16.mxu1 %v2513_v29 }
 0x3d1   : > { %2203 = vmatmul.mubr.msk.bf16.vlgmr.msra.gmra.mrb[12].mxu1 %vm964_vm5, %v1326_v2 }
 0x3d2   : > { %2216 = vmatprep.mubr.msk.bf16.mxu1 %vm2514_vm4, %v2513_v29 }
 0x48c   : > { %v1005_v3 = vpop.f32.mrb[0].mxu1 }
 0x48d   : > { %v2168_v4 = vpop.f32.mrb[1].mxu1  ;;  %v1013_v5 = vsel %vm1012_vm6, %v1005_v3, -inf }
 0x48e   : > { %1014 = vmax.xlane.f32.xlu1 %v1013_v5  ;;  %v1008_v6 = vpop.f32.mrb[2].mxu1 }
 0x48f   : > { %v2169_v7 = vpop.f32.mrb[3].mxu1  ;;  %v1016_v8 = vsel %vm1012_vm6, %v1008_v6, -inf }
 0x490   : > { %1017 = vmax.xlane.f32.xlu0 %v1016_v8 }
 0x494   : > { %v1127_v9 = vpop.f32.mrb[4].mxu1 }
 0x495   : > { %v2180_v10 = vpop.f32.mrb[5].mxu1  ;;  %v1134_v11 = vsel %vm1012_vm6, %v1127_v9, -inf }
 0x496   : > { %1135 = vmax.xlane.f32.xlu0 %v1134_v11  ;;  %v1130_v12 = vpop.f32.mrb[6].mxu1 }
 0x497   : > { %v2181_v13 = vpop.f32.mrb[7].mxu1  ;;  %v1137_v16 = vsel %vm1012_vm6, %v1130_v12, -inf }
 0x49a   : > { %1138 = vmax.xlane.f32.xlu0 %v1137_v16 }
 0x49c   : > { %v1248_v17 = vpop.f32.mrb[8].mxu1 }
 0x49d   : > { %v2192_v18 = vpop.f32.mrb[9].mxu1  ;;  %v1255_v19 = vsel %vm1012_vm6, %v1248_v17, -inf }
 0x49e   : > { %1256 = vmax.xlane.f32.xlu1 %v1255_v19  ;;  %v1251_v20 = vpop.f32.mrb[10].mxu1 }
 0x49f   : > { %v2193_v21 = vpop.f32.mrb[11].mxu1  ;;  %v1258_v22 = vsel %vm1012_vm6, %v1251_v20, -inf }
 0x4a0   : > { %1259 = vmax.xlane.f32.xlu0 %v1258_v22 }
 0x4a4   : > { %v1369_v23 = vpop.f32.mrb[12].mxu1 }
 0x4a5   : > { %v2204_v24 = vpop.f32.mrb[13].mxu1  ;;  %v1376_v25 = vsel %vm1012_vm6, %v1369_v23, -inf }
 0x4a6   : > { %1377 = vmax.xlane.f32.xlu1 %v1376_v25  ;;  %v1372_v26 = vpop.f32.mrb[14].mxu1 }
 0x4a7   : > { %v2205_v27 = vpop.f32.mrb[15].mxu1  ;;  %v1379_v28 = vsel %vm1012_vm6, %v1372_v26, -inf }
 0x4a8   : > { %1380 = vmax.xlane.f32.xlu0 %v1379_v28 }
 0x4b7   : > { %1036 = vrot.lane.b32.xlu1 %v2821_v55, %s2522_s4 }
 0x51b   : > { %v1015_v30 = vpop.xlane.xlu1 %1014 }
 0x51c   : > { %v1019_v31 = vsub.f32 %v1005_v3, %v1015_v30 }
 0x51d   : > { %v1018_v32 = vpop.xlane.xlu0 %1017 }
 0x51e   : > { %v1021_v33 = vmul.f32 1.442695, %v1019_v31  ;;  %v1020_v34 = vsub.f32 %v1008_v6, %v1018_v32 }
 0x520   : > { %2373 = vpow2.f32 %v1021_v33  ;;  %v1023_v35 = vmul.f32 1.442695, %v1020_v34 }
 0x522   : > { %2375 = vpow2.f32 %v1023_v35 }
 0x523   : > { %v1136_v36 = vpop.xlane.xlu0 %1135 }
 0x524   : > { %v1140_v37 = vsub.f32 %v1127_v9, %v1136_v36 }
 0x526   : > { %v1142_v38 = vmul.f32 1.442695, %v1140_v37 }
 0x527   : > { %v1139_v39 = vpop.xlane.xlu0 %1138 }
 0x528   : > { %2377 = vpow2.f32 %v1142_v38  ;;  %v1141_v40 = vsub.f32 %v1130_v12, %v1139_v39 }
 0x52a   : > { %v2374_v41 = vpop.eup %2373  ;;  %v1144_v42 = vmul.f32 1.442695, %v1141_v40 }
 0x52b   : > { %v1257_v43 = vpop.xlane.xlu1 %1256  ;;  %v1025_v44 = vsel %vm1012_vm6, %v2374_v41, 0.0 }
 0x52c   : > { %v2376_v45 = vpop.eup %2375  ;;  %2379 = vpow2.f32 %v1144_v42  ;;  %v1261_v46 = vsub.f32 %v1248_v17, %v1257_v43  ;;  %1026 = vadd.xlane.f32.xlu1 %v1025_v44 }
 0x52d   : > { %v1260_v47 = vpop.xlane.xlu0 %1259  ;;  %v1028_v48 = vsel %vm1012_vm6, %v2376_v45, 0.0 }
 0x52e   : > { %v1263_v49 = vmul.f32 1.442695, %v1261_v46  ;;  %v1262_v50 = vsub.f32 %v1251_v20, %v1260_v47  ;;  %1029 = vadd.xlane.f32.xlu0 %v1028_v48  ;;  %v2361_v48 = vld [vmem:[%s2724_s18] sm:$0xff]  }
 0x52f   : > { %2213 = vmatpush3.bf16.msra.mxu1 %v2361_v48 }
 0x530   : > { %2381 = vpow2.f32 %v1263_v49  ;;  %v1265_v51 = vmul.f32 1.442695, %v1262_v50  ;;  %2214 = vmatprep.subr.bf16.mxu1 %v2513_v29 }
 0x532   : > { %v2378_v52 = vpop.eup %2377  ;;  %2383 = vpow2.f32 %v1265_v51 }
 0x533   : > { %v1378_v53 = vpop.xlane.xlu1 %1377  ;;  %v1146_v54 = vsel %vm1012_vm6, %v2378_v52, 0.0 }
 0x534   : > { %v1382_v56 = vsub.f32 %v1369_v23, %v1378_v53  ;;  %1147 = vadd.xlane.f32.xlu1 %v1146_v54  ;;  %v2362_v53 = vld [vmem:[%s2724_s18 + $0x8] sm:$0xff]  }
 0x535   : > { %v1381_v57 = vpop.xlane.xlu0 %1380  ;;  %2215 = vmatpush3.bf16.msra.mxu1 %v2362_v53 }
 0x536   : > { %v2380_v58 = vpop.eup %2379  ;;  %v1384_v59 = vmul.f32 1.442695, %v1382_v56  ;;  %v1383_v60 = vsub.f32 %v1372_v26, %v1381_v57  ;;  %2228 = vmatprep.subr.bf16.mxu1 %v2513_v29 }
 0x537   : > { %v1037_v61 = vpop.permute.xlu1 %1036  ;;  %v1149_v62 = vsel %vm1012_vm6, %v2380_v58, 0.0 }
 0x538   : > { %2385 = vpow2.f32 %v1384_v59  ;;  %v1386_v63 = vmul.f32 1.442695, %v1383_v60  ;;  %2171 = vmatpush3.bf16.msra.mxu0 %v1037_v61  ;;  %1150 = vadd.xlane.f32.xlu0 %v1149_v62 }
 0x539   : > { %2182 = vmatprep.subr.bf16.mxu0 %v2513_v29 }
 0x53a   : > { %v2382_v0 = vpop.eup %2381  ;;  %2387 = vpow2.f32 %v1386_v63 }
 0x53b   : > { %v1267_v1 = vsel %vm1012_vm6, %v2382_v0, 0.0 }
 0x53c   : > { %v2384_v2 = vpop.eup %2383  ;;  %1268 = vadd.xlane.f32.xlu1 %v1267_v1 }
 0x53d   : > { %v1270_v3 = vsel %vm1012_vm6, %v2384_v2, 0.0 }
 0x53e   : > { %1271 = vadd.xlane.f32.xlu0 %v1270_v3 }
 0x542   : > { %v2386_v4 = vpop.eup %2385 }
 0x543   : > { %v1388_v5 = vsel %vm1012_vm6, %v2386_v4, 0.0 }
 0x544   : > { %v2388_v6 = vpop.eup %2387  ;;  %1389 = vadd.xlane.f32.xlu1 %v1388_v5 }
 0x545   : > { %v1391_v7 = vsel %vm1012_vm6, %v2388_v6, 0.0 }
 0x546   : > { %1392 = vadd.xlane.f32.xlu0 %v1391_v7 }
 0x555   : > { %1278 = vrot.lane.b32.xlu1 %v2821_v55, %s2523_s28 }
 0x559   : > { %1399 = vrot.lane.b32.xlu1 %v2821_v55, %s2524_s27 }
 0x55c   : > { %1157 = vrot.lane.b32.xlu0 %v2821_v55, %s2525_s0  ;;  %s3093_s0 = sld [smem:[#allocation8_spill]] }
 0x562   : > { %p2094_p1 = scmp.ne.s32.totalorder %s3093_s0, 1 }
 0x563   : > { %vm2530_vm9 = vmmov (!%p2094_p1), 0  }
 0x5b9   : > { %v1027_v8 = vpop.xlane.xlu1 %1026 }
 0x5ba   : > { %2389 = vrcp.f32 %v1027_v8 }
 0x5bb   : > { %v1030_v9 = vpop.xlane.xlu0 %1029 }
 0x5bc   : > { %2391 = vrcp.f32 %v1030_v9 }
 0x5c1   : > { %v1148_v17 = vpop.xlane.xlu1 %1147 }
 0x5c4   : > { %v2390_v10 = vpop.eup %2389 }
 0x5c5   : > { %v1151_v11 = vpop.xlane.xlu0 %1150  ;;  %v1033_v13 = vmul.f32 %v2390_v10, %v2374_v41 }
 0x5c6   : > { %v2392_v12 = vpop.eup %2391  ;;  %2393 = vrcp.f32 %v1151_v11 }
 0x5c7   : > { %v1034_v16 = vmul.f32 %v2392_v12, %v2376_v45  ;;  %2395 = vrcp.f32 %v1148_v17  ;;  %v2078_v17 = vld [vmem:[%s3091_s21] ss:$0 sm:$0xff]  ;;  %s3095_s21 = sld [smem:[#allocation25_spill]] (!%p2094_p1) }
 0x5c9   : > { %v1035_v18 = vpack.c.bf16 %v1034_v16, %v1033_v13  ;;  %v1269_v55 = vpop.xlane.xlu1 %1268 }
 0x5cb   : > { %2173 = vmatmul.mubr.msk.bf16.vlgmr.msra.gmra.mrb[4].mxu0 %vm1012_vm6, %v1035_v18  ;;  %v1272_v19 = vpop.xlane.xlu0 %1271 }
 0x5cc   : > { %2184 = vmatprep.mubr.msk.bf16.mxu0 %vm2514_vm4, %v2513_v29  ;;  %2397 = vrcp.f32 %v1272_v19 }
 0x5cd   : > { %2399 = vrcp.f32 %v1269_v55 }
 0x5d0   : > { %v2394_v20 = vpop.eup %2393 }
 0x5d1   : > { %v2396_v22 = vpop.eup %2395  ;;  %v1155_v23 = vmul.f32 %v2394_v20, %v2380_v58  ;;  %v1390_v24 = vpop.xlane.xlu1 %1389 }
 0x5d2   : > { %v1154_v25 = vmul.f32 %v2396_v22, %v2378_v52 }
 0x5d3   : > { %v1393_v21 = vpop.xlane.xlu0 %1392 }
 0x5d4   : > { %2401 = vrcp.f32 %v1393_v21  ;;  %v1156_v27 = vpack.c.bf16 %v1155_v23, %v1154_v25 }
 0x5d5   : > { %2403 = vrcp.f32 %v1390_v24  ;;  %v1279_v30 = vpop.permute.xlu1 %1278 }
 0x5d6   : > { %v2398_v28 = vpop.eup %2397 }
 0x5d7   : > { %v1158_v26 = vpop.permute.xlu0 %1157  ;;  %v2400_v31 = vpop.eup %2399  ;;  %v1276_v32 = vmul.f32 %v2398_v28, %v2384_v2 }
 0x5d8   : > { %2183 = vmatpush3.bf16.msra.mxu0 %v1158_v26  ;;  %v1275_v33 = vmul.f32 %v2400_v31, %v2382_v0 }
 0x5d9   : > { %2194 = vmatprep.subr.bf16.mxu0 %v2513_v29  ;;  %v1400_v36 = vpop.permute.xlu1 %1399 }
 0x5da   : > { %v1277_v34 = vpack.c.bf16 %v1276_v32, %v1275_v33 }
 0x5db   : > { %2185 = vmatmul.mubr.msk.bf16.vlgmr.msra.gmra.mrb[8].mxu0 %vm1012_vm6, %v1156_v27 }
 0x5dc   : > { %2195 = vmatpush3.bf16.msra.mxu0 %v1279_v30  ;;  %2196 = vmatprep.mubr.msk.bf16.mxu0 %vm2514_vm4, %v2513_v29 }
 0x5dd   : > { %2206 = vmatprep.subr.bf16.mxu0 %v2513_v29 }
 0x5de   : > { %v2402_v35 = vpop.eup %2401 }
 0x5df   : > { %v2404_v37 = vpop.eup %2403  ;;  %v1397_v38 = vmul.f32 %v2402_v35, %v2388_v6 }
 0x5e0   : > { %v1396_v39 = vmul.f32 %v2404_v37, %v2386_v4  ;;  %v2364_v37 = vld [vmem:[%s2741_s29 + $0x8] sm:$0xff]  }
 0x5e2   : > { %v1398_v40 = vpack.c.bf16 %v1397_v38, %v1396_v39 }
 0x5e3   : > { %2197 = vmatmul.mubr.msk.bf16.vlgmr.msra.gmra.mrb[12].mxu0 %vm1012_vm6, %v1277_v34 }
 0x5e4   : > { %2207 = vmatpush3.bf16.msra.mxu0 %v1400_v36  ;;  %2208 = vmatprep.mubr.msk.bf16.mxu0 %vm2514_vm4, %v2513_v29  ;;  %v2363_v36 = vld [vmem:[%s2741_s29] sm:$0xff]   ;;  %s3092_s29 = scalar_lea.vmem %s3029_s9, %s2696_s24 }
 0x5e5   : > { %2220 = vmatprep.subr.bf16.mxu0 %v2513_v29 }
 0x5eb   : > { %2209 = vmatmul.mubr.msk.bf16.vlgmr.msra.gmra.mrb[16].mxu0 %vm1012_vm6, %v1398_v40 }
 0x5ec   : > { %2224 = vmatprep.mubr.msk.bf16.mxu0 %vm2514_vm4, %v2513_v29  ;;  %2221 = vmatpush3.bf16.msra.mxu0 %v2363_v36 }
 0x5ed   : > { %2222 = vmatprep.subr.bf16.mxu0 %v2513_v29 }
 0x5f0   : > { %2223 = vmatpush3.bf16.msra.mxu0 %v2364_v37 }
 0x69e   : > { %v1076_v41 = vpop.f32.mrb[4].mxu0 }
 0x69f   : > { %v2174_v42 = vpop.f32.mrb[5].mxu0 }
 0x6a0   : > { %v1079_v43 = vpop.f32.mrb[6].mxu0 }
 0x6a1   : > { %v2175_v44 = vpop.f32.mrb[7].mxu0 }
 0x6ae   : > { %v1197_v45 = vpop.f32.mrb[8].mxu0 }
 0x6af   : > { %v2186_v46 = vpop.f32.mrb[9].mxu0 }
 0x6b0   : > { %v1200_v47 = vpop.f32.mrb[10].mxu0  ;;  %v2082_v46 = vld [vmem:[%s3092_s29] ss:$0 sm:$0xff] }
 0x6b1   : > { %v2344_v49 = vpack.i.bf16 %v1200_v47, %v1197_v45  ;;  %v2187_v50 = vpop.f32.mrb[11].mxu0 }
 0x6b2   : > { %v2083_v50 = vld [vmem:[%s733_s5] ss:$0 sm:$0xff] }
 0x6b3   : > { %2345 = vrot.lane.b32.xlu1 %v2344_v49, %s2526_s26 }
 0x6b6   : > { %v1318_v51 = vpop.f32.mrb[12].mxu0 }
 0x6b7   : > { %v2198_v52 = vpop.f32.mrb[13].mxu0 }
 0x6b8   : > { %v1321_v54 = vpop.f32.mrb[14].mxu0 }
 0x6b9   : > { %v2349_v56 = vpack.i.bf16 %v1321_v54, %v1318_v51  ;;  %v2199_v57 = vpop.f32.mrb[15].mxu0 }
 0x6ba   : > { %v2366_v57 = vld [vmem:[%s2755_s22 + $0x8] sm:$0xff]  }
 0x6bb   : > { %2350 = vrot.lane.b32.xlu0 %v2349_v56, %s2527_s2  ;;  %v2365_v56 = vld [vmem:[%s2755_s22] sm:$0xff]  }
 0x6be   : > { %v1439_v58 = vpop.f32.mrb[16].mxu0 }
 0x6bf   : > { %v2210_v59 = vpop.f32.mrb[17].mxu0 }
 0x6c0   : > { %v1442_v60 = vpop.f32.mrb[18].mxu0  ;;  %v2368_v59 = vld [vmem:[%s2755_s22 + $0x18] sm:$0xff]  }
 0x6c1   : > { %v2354_v61 = vpack.i.bf16 %v1442_v60, %v1439_v58  ;;  %v2211_v62 = vpop.f32.mrb[19].mxu0  ;;  %v2367_v58 = vld [vmem:[%s2755_s22 + $0x10] sm:$0xff]   ;;  %v2084_v60 = vld [vmem:[%s741_s20] ss:$0 sm:$0xff] }
 0x6c3   : > { %2355 = vrot.lane.b32.xlu1 %v2354_v61, %s2528_s19 }
 0x725   : > { %v2346_v63 = vpop.permute.xlu1 %2345 }
 0x726   : > { %v2348_v1 = vunpack.i.h.bf16 %v2346_v63  ;;  %v2347_v2 = vunpack.i.l.bf16 %v2346_v63 }
 0x728   : > { %v1471_v6 = vsel %vm964_vm5, %v1079_v43, %v2348_v1  ;;  %v1470_v7 = vsel %vm964_vm5, %v1076_v41, %v2347_v2 }
 0x72d   : > { %v2351_v0 = vpop.permute.xlu0 %2350 }
 0x72e   : > { %v2353_v3 = vunpack.i.h.bf16 %v2351_v0  ;;  %v2352_v4 = vunpack.i.l.bf16 %v2351_v0 }
 0x730   : > { %v1473_v10 = vsel %vm1012_vm6, %v1471_v6, %v2353_v3  ;;  %v1472_v11 = vsel %vm1012_vm6, %v1470_v7, %v2352_v4 }
 0x735   : > { %v2356_v5 = vpop.permute.xlu1 %2355 }
 0x736   : > { %v2358_v8 = vunpack.i.h.bf16 %v2356_v5  ;;  %v2357_v9 = vunpack.i.l.bf16 %v2356_v5 }
 0x738   : > { %v1476_v12 = vsel %vm1474_vm7, %v1473_v10, %v2358_v8  ;;  %v1475_v13 = vsel %vm1474_vm7, %v1472_v11, %v2357_v9 }
 0x739   : > { %v1477_v16 = vpack.c.bf16 %v1476_v12, %v1475_v13 }
 0x73b   : > { %2217 = vmatmul.mubr.msk.bf16.vlgmr.msra.gmra.mrb[16].mxu1 %vm848_vm3, %v1477_v16 }
 0x73c   : > { %2236 = vmatprep.mubr.msk.bf16.mxu1 %vm2514_vm4, %v2513_v29  ;;  %2229 = vmatpush3.bf16.msra.mxu1 %v2365_v56 }
 0x73d   : > { %2230 = vmatprep.subr.bf16.mxu1 %v2513_v29 }
 0x740   : > { %2231 = vmatpush3.bf16.msra.mxu1 %v2366_v57 }
 0x741   : > { %2232 = vmatprep.subr.bf16.mxu1 %v2513_v29 }
 0x744   : > { %2233 = vmatpush3.bf16.msra.mxu1 %v2367_v58 }
 0x745   : > { %2234 = vmatprep.subr.bf16.mxu1 %v2513_v29 }
 0x748   : > { %2235 = vmatpush3.bf16.msra.mxu1 %v2368_v59 }
 0x80e   : > { %v1538_v18 = vpop.f32.mrb[16].mxu1 }
 0x80f   : > { %v1539_v19 = vadd.f32 %v2078_v17, %v1538_v18  ;;  %v2218_v55 = vpop.f32.mrb[17].mxu1 }
 0x810   : > { %v1541_v20 = vpop.f32.mrb[18].mxu1 }
 0x811   : > { %v2904_v21 = vadd.f32 %v1539_v19, %v2781_v14  ;;  %v1542_v22 = vadd.f32 %v2078_v17, %v1541_v20  ;;  %v2219_v23 = vpop.f32.mrb[19].mxu1 }
 0x812   : > { %v2088_v23 = vld [vmem:[%s749_s17] ss:$0 sm:$0xff]  ;;  %s3094_s17 = sld [smem:[#allocation24_spill]] (!%p2094_p1) }
 0x813   : > { %v2907_v24 = vadd.f32 %v1542_v22, %v2783_v15  ;;  %v1549_v25 = vsel %vm848_vm3, %v2904_v21, 0.0 }
 0x814   : > { %1550 = vadd.xlane.f32.xlu0 %v1549_v25 }
 0x815   : > { %v1552_v26 = vsel %vm848_vm3, %v2907_v24, 0.0 }
 0x816   : > { %1553 = vadd.xlane.f32.xlu1 %v1552_v26 }
 0x8a1   : > { %v1551_v27 = vpop.xlane.xlu0 %1550 }
 0x8a2   : > { %v1555_v28 = vmul.f32 0.03125, %v1551_v27 }
 0x8a3   : > { %v1554_v30 = vpop.xlane.xlu1 %1553 }
 0x8a4   : > { %v1557_v14 = vsub.f32 %v2904_v21, %v1555_v28  ;;  %v1556_v31 = vmul.f32 0.03125, %v1554_v30 }
 0x8a6   : > { %v1558_v32 = vsub.f32 %v2907_v24, %v1556_v31  ;;  %v1559_v15 = vmul.f32 %v1557_v14, %v1557_v14 }
 0x8a8   : > { %v1561_v33 = vsel %vm848_vm3, %v1559_v15, 0.0  ;;  %v1560_v34 = vmul.f32 %v1558_v32, %v1558_v32  ;;  %v2413_v15 = vld [vmem:[%s3094_s17] sm:$0xff] (!%p2094_p1)  }
 0x8a9   : > { %1562 = vadd.xlane.f32.xlu0 %v1561_v33  ;;  %v2529_v33 = vmov (!%p2094_p1), 0.0  }
 0x8aa   : > { %v1564_v35 = vsel %vm848_vm3, %v1560_v34, 0.0  ;;  %2240 = vmatprep.subr.bf16.mxu0 (!%p2094_p1), %v2529_v33 }
 0x8ad   : > { %1565 = vadd.xlane.f32.xlu0 %v1564_v35 }
 0x936   : > { %v1563_v38 = vpop.xlane.xlu0 %1562 }
 0x937   : > { %v1567_v39 = vmul.f32 0.03125, %v1563_v38 }
 0x939   : > { %v1569_v40 = vadd.f32 1e-05, %v1567_v39 }
 0x93a   : > { %v1566_v41 = vpop.xlane.xlu0 %1565 }
 0x93b   : > { %2405 = vrsqrt.f32 %v1569_v40  ;;  %v1568_v42 = vmul.f32 0.03125, %v1566_v41 }
 0x93d   : > { %v1570_v43 = vadd.f32 1e-05, %v1568_v42 }
 0x93f   : > { %2407 = vrsqrt.f32 %v1570_v43 }
 0x945   : > { %v2406_v44 = vpop.eup %2405 }
 0x946   : > { %v1573_v45 = vmul.f32 %v2406_v44, %v1557_v14  ;;  %v1786_v44 = vld [vmem:[%s3095_s21] sm:$0x1] (!%p2094_p1) }
 0x948   : > { %v1581_v48 = vmul.f32 %v2082_v46, %v1573_v45 }
 0x949   : > { %v2408_v47 = vpop.eup %2407 }
 0x94a   : > { %v1574_v49 = vmul.f32 %v2408_v47, %v1558_v32  ;;  %v1589_v52 = vadd.f32 %v2083_v50, %v1581_v48 }
 0x94c   : > { %v1582_v51 = vmul.f32 %v2082_v46, %v1574_v49 }
 0x94e   : > { %v1590_v53 = vadd.f32 %v2083_v50, %v1582_v51 }
 0x950   : > { %v1591_v54 = vpack.c.bf16 %v1590_v53, %v1589_v52 }
 0x952   : > { %2225 = vmatmul.mubr.msk.bf16.vlgmr.msra.gmra.mrb[20].mxu0 %vm848_vm3, %v1591_v54 }
 0x953   : > { %2241 = vmatpush3.bf16.msra.mxu0 (!%p2094_p1), %v2413_v15  ;;  %2244 = vmatprep.mubr.msk.bf16.mxu0 (!%p2094_p1), %vm2530_vm9, %v2529_v33 }
 0x954   : > { %2242 = vmatprep.subr.bf16.mxu0 (!%p2094_p1), %v2529_v33 }
 0xa25   : > { %v1652_v61 = vpop.f32.mrb[20].mxu0 }
 0xa26   : > { %v1653_v62 = vadd.f32 %v2084_v60, %v1652_v61  ;;  %v2226_v63 = vpop.f32.mrb[21].mxu0 }
 0xa27   : > { %v1655_v0 = vpop.f32.mrb[22].mxu0 }
 0xa28   : > { %v1659_v1 = vmul.f32 %v1653_v62, %v1653_v62  ;;  %v1656_v2 = vadd.f32 %v2084_v60, %v1655_v0  ;;  %v2227_v3 = vpop.f32.mrb[23].mxu0 }
 0xa2a   : > { %v1661_v4 = vmul.f32 %v1659_v1, %v1653_v62  ;;  %v1660_v5 = vmul.f32 %v1656_v2, %v1656_v2 }
 0xa2c   : > { %v1663_v6 = vmul.f32 0.044715, %v1661_v4  ;;  %v1662_v7 = vmul.f32 %v1660_v5, %v1656_v2 }
 0xa2e   : > { %v1665_v8 = vadd.f32 %v1663_v6, %v1653_v62  ;;  %v1664_v29 = vmul.f32 0.044715, %v1662_v7 }
 0xa30   : > { %v1667_v9 = vmul.f32 0.7978846, %v1665_v8  ;;  %v1666_v10 = vadd.f32 %v1664_v29, %v1656_v2 }
 0xa32   : > { %2409 = vtanh.f32 %v1667_v9  ;;  %v1668_v11 = vmul.f32 0.7978846, %v1666_v10 }
 0xa34   : > { %2411 = vtanh.f32 %v1668_v11 }
 0xa3c   : > { %v2410_v12 = vpop.eup %2409 }
 0xa3d   : > { %v1671_v13 = vadd.f32 1.0, %v2410_v12 }
 0xa3e   : > { %v2412_v16 = vpop.eup %2411 }
 0xa3f   : > { %v1673_v17 = vmul.f32 0.5, %v1671_v13  ;;  %v1672_v18 = vadd.f32 1.0, %v2412_v16 }
 0xa41   : > { %v1674_v19 = vmul.f32 0.5, %v1672_v18  ;;  %v1675_v55 = vmul.f32 %v1673_v17, %v1653_v62 }
 0xa43   : > { %v1676_v20 = vmul.f32 %v1674_v19, %v1656_v2 }
 0xa45   : > { %v1677_v22 = vpack.c.bf16 %v1676_v20, %v1675_v55 }
 0xa47   : > { %2237 = vmatmul.mubr.msk.bf16.vlgmr.msra.gmra.mrb[20].mxu1 %vm1717_vm8, %v1677_v22 }
 0xb1a   : > { %v1755_v25 = vpop.f32.mrb[20].mxu1 }
 0xb1b   : > { %v1756_v26 = vadd.f32 %v2088_v23, %v1755_v25  ;;  %v2238_v27 = vpop.f32.mrb[21].mxu1  ;;  %1769 = sbr.rel (%p2094_p1) target bundleno = 3083 (0xc0b), region = 96 }
 0xb1c   : > { %v1758_v28 = vpop.f32.mrb[22].mxu1 }
 0xb1d   : > { %v1762_v30 = vadd.f32 %v1756_v26, %v2904_v21  ;;  %v1759_v14 = vadd.f32 %v2088_v23, %v1758_v28  ;;  %v2239_v31 = vpop.f32.mrb[23].mxu1  ;;  %v2414_v21 = vld [vmem:[%s3094_s17 + $0x8] sm:$0xff] (!%p2094_p1)  }
 0xb1e   : > { %2243 = vmatpush3.bf16.msra.mxu0 (!%p2094_p1), %v2414_v21 }
 0xb1f   : > { %1764 = vst.msk [vmem:[#allocation2] sm:$0xff] %vm848_vm3, %v1762_v30  ;;  %v1763_v32 = vadd.f32 %v1759_v14, %v2907_v24  ;;  %v1770_v24 = vsel (!%p2094_p1), %vm848_vm3, %v1762_v30, 0.0 }
 0xb21   : > { %1765 = vst.msk [vmem:[#allocation2 + $0x8] sm:$0xff] %vm848_vm3, %v1763_v32  ;;  %v1771_v34 = vsel (!%p2094_p1), %vm848_vm3, %v1763_v32, 0.0 }
 0xb22   : > { %v1772_v35 = vadd.f32 %v1771_v34, %v1770_v24 }
 0xb24   : > { %v1773_v36 = vrot.slane %v1772_v35, 4 }
 0xb26   : > { %v1774_v37 = vadd.f32 %v1773_v36, %v1772_v35 }
 0xb28   : > { %v1775_v38 = vrot.slane %v1774_v37, 2 }
 0xb2a   : > { %v1776_v39 = vadd.f32 %v1775_v38, %v1774_v37 }
 0xb2c   : > { %v1777_v40 = vrot.slane %v1776_v39, 1 }
 0xb2e   : > { %v1778_v41 = vadd.f32 %v1777_v40, %v1776_v39 }
 0xb30   : > { %v1780_v42 = vmul.f32 0.0625, %v1778_v41 }
 0xb32   : > { %v1781_v43 = vpack.c.bf16 %v1780_v42, %v1780_v42 }
 0xb34   : > { %2245 = vmatmul.mubr.msk.bf16.vlgmr.msra.gmra.mrb[0].mxu0 %vm848_vm3, %v1781_v43 }
 0xc07   : > { %v1836_v45 = vpop.f32.mrb[0].mxu0 }
 0xc08   : > { %v1837_v46 = vadd.f32 %v1836_v45, %v1786_v44  ;;  %v2246_v47 = vpop.f32.mrb[1].mxu0 }
 0xc09   : > { %v1839_v48 = vpop.f32.mrb[2].mxu0 }
 0xc0a   : > { %1842 = vst [vmem:[%s2759_s16] sm:$0x1] %v1837_v46  ;;  %v2247_v49 = vpop.f32.mrb[3].mxu0 }
 0xc0b PF: > { %s3096_s30 = sld [smem:[#allocation9_spill]]  ;;  %s3098_s5 = sld [smem:[#allocation26_spill]] }
 0xc0c   : > { %s1856_s22 = sshll.u32 %s2759_s16, 4  ;;  %s3099_s20 = sand.u32 1, %s2485_s25   ;;  %s1857_s22 = int_to_ptr.vmem [resolvable:$true] %s1856_s22 }
 0xc0d   : > { %s1844_s0 = scalar_lea.sflag [#allocation4], %s3099_s20  ;;  %s2415_s26 = scalar_lea.vmem %s1857_s22, 16 }
 0xc0e   : > { %p2416_p2 = scmp.ne.s32.totalorder %s1857_s22, %s2415_s26  ;;  %s2531_s24 = smov [#allocation3]  }
 0xc0f   : > { %s2419_s2 = sshll.u32 %s2531_s24, 4  ;;  %s2420_s2 = int_to_ptr.vmem [resolvable:$false] %s2419_s2 }
 0xc10   : > { %p2417_p4 = pnand %p2416_p2, %p2671_p3  ;;  %s2421_s19 = scalar_lea.vmem %s2420_s2, 32 }
 0xc11   : > { %s2098_s29 = sshll.u32 %s3096_s30, 4  ;;  %p2422_p6 = scmp.lt.s32.totalorder %s1857_s22, %s2420_s2 }
 0xc12   : > { %s2970_s27 = scalar_lea.hbm %s3098_s5, %s2098_s29  ;;  %p2418_p5 = pneg %p2417_p4 }
 0xc13   : > { %p2423_p7 = scmp.lt.s32.totalorder %s2421_s19, %s2415_s26 }
 0xc15   : > { %p2424_p8 = por %p2423_p7, %p2422_p6 }
 0xc17   : > { %p2425_p10 = pnand %p2424_p8, %p2418_p5 }
 0xc19   : > { %2428 = shalt.err (!%p2425_p10)
}
 0xc1a   : > { %s2429_s16 = scalar_lea.hbm %s2970_s27, 16  ;;  %s2433_s21 = scalar_lea.hbm %s3098_s5, 32 }
 0xc1b   : > { %p2430_p11 = scmp.ne.s32.totalorder %s2970_s27, %s2429_s16  ;;  %p2434_p0 = scmp.lt.u32.totalorder %s2970_s27, %s3098_s5 }
 0xc1c   : > { %p2435_p1 = scmp.lt.u32.totalorder %s2433_s21, %s2429_s16  ;;  %p2437_p4 = scmp.lt.u32.totalorder %s2429_s16, %s2970_s27 }
 0xc1d   : > { %p2431_p12 = pnand %p2430_p11, %p2671_p3 }
 0xc1e   : > { %p2436_p2 = por %p2435_p1, %p2434_p0 }
 0xc1f   : > { %p2432_p13 = pneg %p2431_p12 }
 0xc20   : > { %p2438_p5 = por %p2437_p4, %p2436_p2 }
 0xc22   : > { %p2439_p6 = pnand %p2438_p5, %p2432_p13 }
 0xc24   : > { %2442 = shalt.err (!%p2439_p6)
}
 0xc25   : > { %2248 = dma.vmem_to_hbm [thread:$0]  (%p2671_p3), %s1857_s22, 16, %s2970_s27, %s1844_s0  }
 0xc26 PF: > { %s3100_s4 = sld [smem:[#allocation12_spill]]  ;;  %s3101_s28 = sld [smem:[#allocation6_spill]] }
 0xc2c   : > { %p2254_p7 = scmp.ge.s32.totalorder %s3100_s4, 2  ;;  %s1868_s26 = sand.u32 1, %s3101_s28  }
 0xc2d   : > { %s1869_s24 = scalar_lea.sflag [#allocation4], %s1868_s26 }
 0xc2e   : > { %p2251_p8 = pnand %p2254_p7, %p2681_p9 }
 0xc30   : > { %2476 = dma.done.wait (!%p2251_p8), %s1869_s24, 16  }
 0xc31   : > { %2478 = vsyncadd (!%p2251_p8), %s1869_s24, 4294967280  ;;  %s30_s30 = sadd.s32 1, %s3100_s4   ;;  %s3103_s2 = sld [smem:[#allocation7_spill]] }
 0xc32   : > { %p27_p10 = scmp.ge.s32.totalorder %s30_s30, 6   ;;  %s3104_s26 = sld [smem:[#allocation17_spill]] }
 0xc33   : > { %s3105_s27 = sld [smem:[#allocation10_spill]]  ;;  %s3106_s28 = sld [smem:[#allocation11_spill]] }
 0xc34   : > { %s3107_s29 = sld [smem:[#allocation13_spill]]  ;;  %s3108_s0 = sld [smem:[#allocation15_spill]] }
 0xc35   : > { %s3109_s24 = smov %s2485_s25  ;;  %29 = sbr.rel (!%p27_p10) target bundleno = 15 (0xf), region = 167 }
 0xc37   : > { %s3110_s25 = smov %s3103_s2 }
 0xc3c   :  { %1873 = vsyncpa [#allocation4], 1 }
 0xc3d   :  { %1875 = vsyncpa [#allocation4 + $0x1], 1 }

</bundles_post_ra>
